<compile_context>
chip_gen: v7x
topology: tpu7x:2x2x1
jax: 0.10.0
libtpu: 0.0.40
codegen_flags: <defaults>
</compile_context>

<pallas_src>
import math

import numpy as np
import jax
import jax.numpy as jnp
from jax import lax
from jax.experimental import pallas as pl
from jax.experimental.pallas import tpu as pltpu


# ----------------------------- stand-in sizes ------------------------------
B = 2             # batch
HIMG = 16         # input image height
WIMG = 16         # input image width
WPAD = WIMG + 2   # w-padded image width (1-column zero halo each side)
C = 4             # stem / residual-block channels
HP = 8            # feature height after the stride-2 stem
WP = 8            # feature width  after the stride-2 stem (= LSTM sequence length)
T = WP
CH = C * HP       # feature lanes (c, h) == LSTM input size
D = CH
HID = 32          # LSTM hidden size -> 4*HID = 128 = one vreg lane width
F1 = 16           # fc1 width
NC = 5            # num classes
OUT_R, OUT_L = 8, 128   # lane-dense output tile


# ------------------------------ fused kernel -------------------------------
def _fused_kernel(img_ref, convw_ref, lstm_ref, head_ref, bias_ref, o_ref):
    f32, bf16 = jnp.float32, jnp.bfloat16
    Q1R = 3 * HIMG          # rows of the conv1 weight slab
    S1R = 3 * CH            # rows of each stride-1 conv weight slab

    # ---- conv1: 3x3, stride 2, pad 1, 1->C, +bias, ReLU (one K-concat matmul)
    per_b = []
    for b in range(B):
        taps = [img_ref[pl.ds(b * WPAD + dw, WP, stride=2), :] for dw in range(3)]
        per_b.append(jnp.concatenate(taps, axis=1))              # (WP, 3*HIMG)
    lhs1 = jnp.concatenate(per_b, axis=0).astype(bf16)            # (B*WP, 3*HIMG)
    feat = jnp.dot(lhs1, convw_ref[0:Q1R, :],
                   preferred_element_type=f32) + bias_ref[0:1, 0:CH]
    feat = jnp.maximum(feat, 0.0)                                  # (B*WP, CH) f32

    identity = feat

    # ---- residual block: conv_a(3x3 s1)+ReLU, conv_b(3x3 s1)+identity, ReLU
    # w-shifts via pltpu.roll on the (b, w) row axis + hoisted border masks
    # (rows rolled across a batch/image boundary are exactly the masked ones).
    w_of_row = lax.broadcasted_iota(jnp.int32, (B * WP, CH), 0) % WP
    not_w_first = w_of_row != 0
    not_w_last = w_of_row != WP - 1

    def conv3x3_s1(x, w_rows, bias_row):
        xl = jnp.where(not_w_first, pltpu.roll(x, 1, axis=0), 0.0)           # row w-1
        xr = jnp.where(not_w_last, pltpu.roll(x, B * WP - 1, axis=0), 0.0)   # row w+1
        lhs = jnp.concatenate([xl, x, xr], axis=1).astype(bf16)   # (B*WP, 3*CH)
        return jnp.dot(lhs, w_rows, preferred_element_type=f32) + bias_row

    fa = jnp.maximum(
        conv3x3_s1(feat, convw_ref[Q1R:Q1R + S1R, :], bias_ref[1:2, 0:CH]), 0.0)
    fb = jnp.maximum(
        conv3x3_s1(fa, convw_ref[Q1R + S1R:Q1R + 2 * S1R, :], bias_ref[2:3, 0:CH])
        + identity, 0.0)                                           # (B*WP, CH)

    # ---- global standardization: (x - mean) / std, unbiased, two-pass -------
    n = float(B * WP * CH)
    mean = jnp.sum(fb) / n
    cen = fb - mean
    var = jnp.sum(cen * cen) / (n - 1.0)
    seq = cen * lax.rsqrt(jnp.maximum(var, 1e-12))                 # rows stay (b, w)

    # ---- LSTM: hoisted input projection (+ combined bias), then recurrence --
    xw = jnp.dot(seq.astype(bf16), lstm_ref[0:D, :],
                 preferred_element_type=f32) + bias_ref[3:4, :]    # (B*WP, 4H) f32
    whh = lstm_ref[D:D + HID, :]                                   # (HID, 4H) bf16

    # per-step inputs: rows (b, w=t); static slices, off the recurrence chain
    xs = [jnp.concatenate([xw[b * WP + t:b * WP + t + 1, :] for b in range(B)],
                          axis=0) for t in range(T)]

    lane = lax.broadcasted_iota(jnp.int32, (1, 4 * HID), 1)
    g_sel = (lane >= 2 * HID) & (lane < 3 * HID)
    g_mul = jnp.where(g_sel, 2.0, 1.0)        # tanh(x) = 2*sigmoid(2x) - 1
    g_off = jnp.where(g_sel, -1.0, 0.0)

    h = jnp.zeros((B, HID), f32)
    c = jnp.zeros((B, HID), f32)
    for t in range(T):                         # short static trip count (unrolled)
        gates = xs[t] + jnp.dot(h.astype(bf16), whh, preferred_element_type=f32)
        a = jax.nn.sigmoid(gates * g_mul)      # ONE transcendental pass per step
        act = a * g_mul + g_off                # fixes the g quarter up to tanh
        i_g = act[:, 0 * HID:1 * HID]
        f_g = act[:, 1 * HID:2 * HID]
        g_g = act[:, 2 * HID:3 * HID]
        o_g = act[:, 3 * HID:4 * HID]
        c = f_g * c + i_g * g_g
        h = o_g * jnp.tanh(c)

    # ---- head: fc1 -> tanh(x/100) -> fc2, lane-dense (8,128) output store ---
    h8 = jnp.concatenate([h, jnp.zeros((OUT_R - B, HID), f32)], axis=0)
    z = jnp.dot(h8.astype(bf16), head_ref[0:HID, :],
                preferred_element_type=f32) + bias_ref[4:5, :]
    z = jnp.tanh(z * 0.01)
    z = jnp.dot(z.astype(bf16), head_ref[HID:HID + OUT_L, :],
                preferred_element_type=f32) + bias_ref[5:6, :]
    o_ref[...] = z                                                 # full (8,128) store


# ------------------- one-time, host-side weight folding --------------------
def _fold_params(p):
    """Fold the conv taps and pack ALL constants into 4 kernel operands."""
    f32, bf16 = jnp.float32, jnp.bfloat16
    hp = lax.Precision.HIGHEST

    # conv1 (stride 2): fold dh tap + h-stride selection into a (3*HIMG, CH) slab
    sel_h = np.zeros((3, HIMG, HP), np.float32)          # [dh, h_img, h_out]
    for dh in range(3):
        for ho in range(HP):
            hi = 2 * ho + dh - 1
            if 0 <= hi < HIMG:
                sel_h[dh, hi, ho] = 1.0
    w1s = p["conv1_w"][:, 0]                             # (C, 3, 3) [co, dh, dw]
    q1 = jnp.einsum("cdw,dmh->wmch", w1s, jnp.asarray(sel_h), precision=hp)
    q1 = q1.reshape(3 * HIMG, CH)                        # rows (dw, h_img), cols (co, ho)

    # stride-1 3x3 convs: per-w-tap (CH, CH) blocks stacked on the contraction axis
    sel_r = np.zeros((3, HP, HP), np.float32)            # [dh, h_in, h_out]
    for dh in range(3):
        for ho in range(HP):
            hi = ho + dh - 1
            if 0 <= hi < HP:
                sel_r[dh, hi, ho] = 1.0
    sel_r = jnp.asarray(sel_r)

    def fold_s1(w):
        m = jnp.einsum("oidw,dnh->winoh", w, sel_r, precision=hp)   # (3,C,HP,C,HP)
        return m.reshape(3 * CH, CH)                     # rows (dw, ci, h_in)

    convw = jnp.concatenate([q1, fold_s1(p["res_wa"]), fold_s1(p["res_wb"])],
                            axis=0).astype(bf16)         # (240, 32) bf16

    # LSTM weights: [W_ih ; W_hh] rows
    lstm = jnp.concatenate([p["lstm_wih"], p["lstm_whh"]], axis=0).astype(bf16)

    # head weights, zero-padded to 128 lanes: [fc1 (HID,128) ; fc2 (128,128)]
    w1p = jnp.zeros((HID, OUT_L), f32).at[:, :F1].set(p["fc1_w"])
    w2p = jnp.zeros((OUT_L, OUT_L), f32).at[:F1, :NC].set(p["fc2_w"])
    head = jnp.concatenate([w1p, w2p], axis=0).astype(bf16)          # (160, 128)

    # all biases packed into one (8, 128) f32 tile (elementwise adds stay f32)
    bias = jnp.zeros((8, OUT_L), f32)
    bias = bias.at[0, :CH].set(jnp.repeat(p["conv1_b"], HP))
    bias = bias.at[1, :CH].set(jnp.repeat(p["res_ba"], HP))
    bias = bias.at[2, :CH].set(jnp.repeat(p["res_bb"], HP))
    bias = bias.at[3, :].set(p["lstm_b"][0])
    bias = bias.at[4, :F1].set(p["fc1_b"][0])
    bias = bias.at[5, :NC].set(p["fc2_b"][0])

    return dict(convw=convw, lstm=lstm, head=head, bias=bias)


_VMEM = pl.BlockSpec(memory_space=pltpu.MemorySpace.VMEM)


@jax.jit
def res_lstm_forward(x, folded):
    """x: (B, HIMG, WIMG) float32 -> logits (B, NC).  One fused Pallas call."""
    # Host-side prep (fuses under jit): rows=(b, w_img), cols=h_img, with a
    # 1-column zero halo along w so the kernel's stride-2 tap reads stay in range.
    img = jnp.pad(jnp.transpose(x, (0, 2, 1)).astype(jnp.float32),
                  ((0, 0), (1, 1), (0, 0))).reshape(B * WPAD, HIMG)

    out = pl.pallas_call(
        _fused_kernel,
        out_shape=jax.ShapeDtypeStruct((OUT_R, OUT_L), jnp.float32),
        in_specs=[_VMEM] * 5,
        out_specs=_VMEM,
    )(img, folded["convw"], folded["lstm"], folded["head"], folded["bias"])
    return out[:B, :NC]


# ------------------ parameters (PyTorch-style uniform init) -----------------
def init_params(key):
    ks = jax.random.split(key, 13)
    u = lambda k, shape, bnd: jax.random.uniform(k, shape, jnp.float32, -bnd, bnd)
    p = {}
    b0 = 1.0 / math.sqrt(1 * 9)
    p["conv1_w"] = u(ks[0], (C, 1, 3, 3), b0)
    p["conv1_b"] = u(ks[1], (C,), b0)
    b1 = 1.0 / math.sqrt(C * 9)
    p["res_wa"] = u(ks[2], (C, C, 3, 3), b1)
    p["res_ba"] = u(ks[3], (C,), b1)
    p["res_wb"] = u(ks[4], (C, C, 3, 3), b1)
    p["res_bb"] = u(ks[5], (C,), b1)
    kH = 1.0 / math.sqrt(HID)
    p["lstm_wih"] = u(ks[6], (D, 4 * HID), kH)           # transposed vs torch (4H, D)
    p["lstm_whh"] = u(ks[7], (HID, 4 * HID), kH)
    p["lstm_b"] = u(ks[8], (1, 4 * HID), kH)             # b_ih + b_hh combined
    p["fc1_w"] = u(ks[9], (HID, F1), kH)
    p["fc1_b"] = u(ks[10], (1, F1), kH)
    kF = 1.0 / math.sqrt(F1)
    p["fc2_w"] = u(ks[11], (F1, NC), kF)
    p["fc2_b"] = u(ks[12], (1, NC), kF)
    return p


# -------------------- pure-JAX reference (numerics check) -------------------
def reference_forward(x, p):
    f32 = jnp.float32
    hp = lax.Precision.HIGHEST
    dn = ("NCHW", "OIHW", "NCHW")
    conv = lambda a, w, s: lax.conv_general_dilated(
        a, w, (s, s), ((1, 1), (1, 1)), dimension_numbers=dn, precision=hp)
    img = x[:, None].astype(f32)
    f = jax.nn.relu(conv(img, p["conv1_w"], 2) + p["conv1_b"][None, :, None, None])
    fa = jax.nn.relu(conv(f, p["res_wa"], 1) + p["res_ba"][None, :, None, None])
    fb = jax.nn.relu(conv(fa, p["res_wb"], 1) + p["res_bb"][None, :, None, None] + f)
    seq = jnp.transpose(fb, (0, 3, 1, 2)).reshape(B, WP, C * HP)
    seq = (seq - jnp.mean(seq)) / jnp.std(seq, ddof=1)
    h = jnp.zeros((B, HID), f32)
    c = jnp.zeros((B, HID), f32)
    for t in range(WP):
        g = (jnp.dot(seq[:, t], p["lstm_wih"], precision=hp)
             + jnp.dot(h, p["lstm_whh"], precision=hp) + p["lstm_b"])
        i_g = jax.nn.sigmoid(g[:, 0 * HID:1 * HID])
        f_g = jax.nn.sigmoid(g[:, 1 * HID:2 * HID])
        g_g = jnp.tanh(g[:, 2 * HID:3 * HID])
        o_g = jax.nn.sigmoid(g[:, 3 * HID:4 * HID])
        c = f_g * c + i_g * g_g
        h = o_g * jnp.tanh(c)
    z = jnp.dot(h, p["fc1_w"], precision=hp) + p["fc1_b"]
    z = jnp.tanh(z / 100.0)
    return jnp.dot(z, p["fc2_w"], precision=hp) + p["fc2_b"]


if __name__ == "__main__":
    key = jax.random.PRNGKey(0)
    kx, kp = jax.random.split(key)

    x = jax.random.normal(kx, (B, HIMG, WIMG), jnp.float32)
    params = init_params(kp)
    folded = _fold_params(params)

    logits = jax.block_until_ready(res_lstm_forward(x, folded))
    assert logits.shape == (B, NC) and bool(jnp.all(jnp.isfinite(logits)))

    # correctness check vs. a pure-f32 JAX reference of the same forward
    # (tolerance covers the bf16 MXU operands; accumulation stays f32)
    ref = jax.block_until_ready(reference_forward(x, params))
    assert jnp.allclose(logits, ref, rtol=5e-2, atol=1e-2), (
        "max abs err %e" % float(jnp.max(jnp.abs(logits - ref))))

    print("KERNEL_OK")
</pallas_src>

<mosaic_0001>
module attributes {stable_mosaic.version = 11 : i64} {
  func.func @_fused_kernel(%arg0: memref<36x16xf32, #tpu.memory_space<vmem>>, %arg1: memref<240x32xbf16, #tpu.memory_space<vmem>>, %arg2: memref<64x128xbf16, #tpu.memory_space<vmem>>, %arg3: memref<160x128xbf16, #tpu.memory_space<vmem>>, %arg4: memref<8x128xf32, #tpu.memory_space<vmem>>, %arg5: memref<8x128xf32, #tpu.memory_space<vmem>>) attributes {dimension_semantics = [], scalar_prefetch = 0 : i64, scratch_operands = 0 : i64, tpu.core_type = #tpu.core_type<tc>} {
    %c0 = arith.constant 0 : index
    %c0_0 = arith.constant 0 : index
    %0 = tpu.strided_load %arg0[%c0, %c0_0] {strides = array<i32: 2, 1>} : memref<36x16xf32, #tpu.memory_space<vmem>>, vector<8x16xf32>
    %c1 = arith.constant 1 : index
    %c0_1 = arith.constant 0 : index
    %1 = tpu.strided_load %arg0[%c1, %c0_1] {strides = array<i32: 2, 1>} : memref<36x16xf32, #tpu.memory_space<vmem>>, vector<8x16xf32>
    %c2 = arith.constant 2 : index
    %c0_2 = arith.constant 0 : index
    %2 = tpu.strided_load %arg0[%c2, %c0_2] {strides = array<i32: 2, 1>} : memref<36x16xf32, #tpu.memory_space<vmem>>, vector<8x16xf32>
    %3 = tpu.concatenate %0, %1, %2 in 1 : vector<8x16xf32>, vector<8x16xf32>, vector<8x16xf32> -> vector<8x48xf32>
    %c18 = arith.constant 18 : index
    %c0_3 = arith.constant 0 : index
    %4 = tpu.strided_load %arg0[%c18, %c0_3] {strides = array<i32: 2, 1>} : memref<36x16xf32, #tpu.memory_space<vmem>>, vector<8x16xf32>
    %c19 = arith.constant 19 : index
    %c0_4 = arith.constant 0 : index
    %5 = tpu.strided_load %arg0[%c19, %c0_4] {strides = array<i32: 2, 1>} : memref<36x16xf32, #tpu.memory_space<vmem>>, vector<8x16xf32>
    %c20 = arith.constant 20 : index
    %c0_5 = arith.constant 0 : index
    %6 = tpu.strided_load %arg0[%c20, %c0_5] {strides = array<i32: 2, 1>} : memref<36x16xf32, #tpu.memory_space<vmem>>, vector<8x16xf32>
    %7 = tpu.concatenate %4, %5, %6 in 1 : vector<8x16xf32>, vector<8x16xf32>, vector<8x16xf32> -> vector<8x48xf32>
    %8 = tpu.concatenate %3, %7 in 0 : vector<8x48xf32>, vector<8x48xf32> -> vector<16x48xf32>
    %9 = arith.truncf %8 : vector<16x48xf32> to vector<16x48xbf16>
    %c0_6 = arith.constant 0 : index
    %c0_7 = arith.constant 0 : index
    %10 = vector.load %arg1[%c0_6, %c0_7] : memref<240x32xbf16, #tpu.memory_space<vmem>>, vector<48x32xbf16>
    %cst = arith.constant dense<0.000000e+00> : vector<16x32xf32>
    %11 = tpu.matmul %9, %10, %cst {dimension_numbers = #tpu.dot_dimension_numbers<[1], [0], [0], [1], [0, 0, 1, 1], [], []>} : vector<16x48xbf16>, vector<48x32xbf16>, vector<16x32xf32> -> vector<16x32xf32>
    %c0_8 = arith.constant 0 : index
    %c0_9 = arith.constant 0 : index
    %12 = vector.load %arg4[%c0_8, %c0_9] : memref<8x128xf32, #tpu.memory_space<vmem>>, vector<1x32xf32>
    %13 = vector.broadcast %12 : vector<1x32xf32> to vector<16x32xf32>
    %14 = arith.addf %11, %13 : vector<16x32xf32>
    %cst_10 = arith.constant 0.000000e+00 : f32
    %15 = vector.broadcast %cst_10 : f32 to vector<16x32xf32>
    %16 = arith.maximumf %14, %15 : vector<16x32xf32>
    %17 = tpu.iota {dimensions = array<i32: 0>} : vector<16x32xi32>
    %c8_i32 = arith.constant 8 : i32
    %c0_i32 = arith.constant 0 : i32
    %18 = arith.cmpi eq, %c8_i32, %c0_i32 : i32
    %c1_i32 = arith.constant 1 : i32
    %19 = arith.select %18, %c1_i32, %c8_i32 : i32
    %20 = vector.broadcast %19 : i32 to vector<16x32xi32>
    %21 = arith.remsi %17, %20 : vector<16x32xi32>
    %c0_i32_11 = arith.constant 0 : i32
    %22 = vector.broadcast %c0_i32_11 : i32 to vector<16x32xi32>
    %23 = arith.cmpi ne, %21, %22 : vector<16x32xi32>
    %c0_i32_12 = arith.constant 0 : i32
    %24 = vector.broadcast %c0_i32_12 : i32 to vector<16x32xi32>
    %25 = arith.cmpi slt, %21, %24 : vector<16x32xi32>
    %c0_i32_13 = arith.constant 0 : i32
    %26 = arith.cmpi slt, %19, %c0_i32_13 : i32
    %27 = vector.broadcast %26 : i1 to vector<16x32xi1>
    %28 = vector.broadcast %27 : vector<16x32xi1> to vector<16x32xi1>
    %29 = arith.xori %25, %28 : vector<16x32xi1>
    %30 = arith.andi %29, %23 : vector<16x32xi1>
    %31 = vector.broadcast %19 : i32 to vector<16x32xi32>
    %32 = arith.addi %21, %31 : vector<16x32xi32>
    %33 = arith.select %30, %32, %21 : vector<16x32xi1>, vector<16x32xi32>
    %c0_i32_14 = arith.constant 0 : i32
    %34 = vector.broadcast %c0_i32_14 : i32 to vector<16x32xi32>
    %35 = arith.cmpi ne, %33, %34 : vector<16x32xi32>
    %c7_i32 = arith.constant 7 : i32
    %36 = vector.broadcast %c7_i32 : i32 to vector<16x32xi32>
    %37 = arith.cmpi ne, %33, %36 : vector<16x32xi32>
    %c48 = arith.constant 48 : index
    %c0_15 = arith.constant 0 : index
    %38 = vector.load %arg1[%c48, %c0_15] : memref<240x32xbf16, #tpu.memory_space<vmem>>, vector<96x32xbf16>
    %c1_16 = arith.constant 1 : index
    %c0_17 = arith.constant 0 : index
    %39 = vector.load %arg4[%c1_16, %c0_17] : memref<8x128xf32, #tpu.memory_space<vmem>>, vector<1x32xf32>
    %c1_i32_18 = arith.constant 1 : i32
    %40 = tpu.dynamic_rotate %16 by %c1_i32_18 dim 0 : vector<16x32xf32>, i32 -> vector<16x32xf32>
    %cst_19 = arith.constant 0.000000e+00 : f32
    %41 = vector.broadcast %cst_19 : f32 to vector<16x32xf32>
    %42 = arith.select %35, %40, %41 : vector<16x32xi1>, vector<16x32xf32>
    %c15_i32 = arith.constant 15 : i32
    %43 = tpu.dynamic_rotate %16 by %c15_i32 dim 0 : vector<16x32xf32>, i32 -> vector<16x32xf32>
    %cst_20 = arith.constant 0.000000e+00 : f32
    %44 = vector.broadcast %cst_20 : f32 to vector<16x32xf32>
    %45 = arith.select %37, %43, %44 : vector<16x32xi1>, vector<16x32xf32>
    %46 = tpu.concatenate %42, %16, %45 in 1 : vector<16x32xf32>, vector<16x32xf32>, vector<16x32xf32> -> vector<16x96xf32>
    %47 = arith.truncf %46 : vector<16x96xf32> to vector<16x96xbf16>
    %cst_21 = arith.constant dense<0.000000e+00> : vector<16x32xf32>
    %48 = tpu.matmul %47, %38, %cst_21 {dimension_numbers = #tpu.dot_dimension_numbers<[1], [0], [0], [1], [0, 0, 1, 1], [], []>} : vector<16x96xbf16>, vector<96x32xbf16>, vector<16x32xf32> -> vector<16x32xf32>
    %49 = vector.broadcast %39 : vector<1x32xf32> to vector<16x32xf32>
    %50 = arith.addf %48, %49 : vector<16x32xf32>
    %cst_22 = arith.constant 0.000000e+00 : f32
    %51 = vector.broadcast %cst_22 : f32 to vector<16x32xf32>
    %52 = arith.maximumf %50, %51 : vector<16x32xf32>
    %c144 = arith.constant 144 : index
    %c0_23 = arith.constant 0 : index
    %53 = vector.load %arg1[%c144, %c0_23] : memref<240x32xbf16, #tpu.memory_space<vmem>>, vector<96x32xbf16>
    %c2_24 = arith.constant 2 : index
    %c0_25 = arith.constant 0 : index
    %54 = vector.load %arg4[%c2_24, %c0_25] : memref<8x128xf32, #tpu.memory_space<vmem>>, vector<1x32xf32>
    %c1_i32_26 = arith.constant 1 : i32
    %55 = tpu.dynamic_rotate %52 by %c1_i32_26 dim 0 : vector<16x32xf32>, i32 -> vector<16x32xf32>
    %cst_27 = arith.constant 0.000000e+00 : f32
    %56 = vector.broadcast %cst_27 : f32 to vector<16x32xf32>
    %57 = arith.select %35, %55, %56 : vector<16x32xi1>, vector<16x32xf32>
    %c15_i32_28 = arith.constant 15 : i32
    %58 = tpu.dynamic_rotate %52 by %c15_i32_28 dim 0 : vector<16x32xf32>, i32 -> vector<16x32xf32>
    %cst_29 = arith.constant 0.000000e+00 : f32
    %59 = vector.broadcast %cst_29 : f32 to vector<16x32xf32>
    %60 = arith.select %37, %58, %59 : vector<16x32xi1>, vector<16x32xf32>
    %61 = tpu.concatenate %57, %52, %60 in 1 : vector<16x32xf32>, vector<16x32xf32>, vector<16x32xf32> -> vector<16x96xf32>
    %62 = arith.truncf %61 : vector<16x96xf32> to vector<16x96xbf16>
    %cst_30 = arith.constant dense<0.000000e+00> : vector<16x32xf32>
    %63 = tpu.matmul %62, %53, %cst_30 {dimension_numbers = #tpu.dot_dimension_numbers<[1], [0], [0], [1], [0, 0, 1, 1], [], []>} : vector<16x96xbf16>, vector<96x32xbf16>, vector<16x32xf32> -> vector<16x32xf32>
    %64 = vector.broadcast %54 : vector<1x32xf32> to vector<16x32xf32>
    %65 = arith.addf %63, %64 : vector<16x32xf32>
    %66 = arith.addf %65, %16 : vector<16x32xf32>
    %cst_31 = arith.constant 0.000000e+00 : f32
    %67 = vector.broadcast %cst_31 : f32 to vector<16x32xf32>
    %68 = arith.maximumf %66, %67 : vector<16x32xf32>
    %69 = vector.shape_cast %68 : vector<16x32xf32> to vector<1x16x32xf32>
    %cst_32 = arith.constant dense<0.000000e+00> : vector<1xf32>
    %70 = vector.multi_reduction <add>, %69, %cst_32 [1, 2] : vector<1x16x32xf32> to vector<1xf32>
    %71 = vector.shape_cast %70 : vector<1xf32> to vector<1x1x1xf32>
    %72 = vector.extract %71[0, 0, 0] : f32 from vector<1x1x1xf32>
    %cst_33 = arith.constant 5.120000e+02 : f32
    %73 = arith.divf %72, %cst_33 : f32
    %74 = vector.broadcast %73 : f32 to vector<16x32xf32>
    %75 = arith.subf %68, %74 : vector<16x32xf32>
    %76 = arith.mulf %75, %75 : vector<16x32xf32>
    %77 = vector.shape_cast %76 : vector<16x32xf32> to vector<1x16x32xf32>
    %cst_34 = arith.constant dense<0.000000e+00> : vector<1xf32>
    %78 = vector.multi_reduction <add>, %77, %cst_34 [1, 2] : vector<1x16x32xf32> to vector<1xf32>
    %79 = vector.shape_cast %78 : vector<1xf32> to vector<1x1x1xf32>
    %80 = vector.extract %79[0, 0, 0] : f32 from vector<1x1x1xf32>
    %cst_35 = arith.constant 5.110000e+02 : f32
    %81 = arith.divf %80, %cst_35 : f32
    %cst_36 = arith.constant 9.99999996E-13 : f32
    %82 = arith.maximumf %81, %cst_36 : f32
    %83 = math.rsqrt %82 : f32
    %84 = vector.broadcast %83 : f32 to vector<16x32xf32>
    %85 = arith.mulf %75, %84 : vector<16x32xf32>
    %86 = arith.truncf %85 : vector<16x32xf32> to vector<16x32xbf16>
    %c0_37 = arith.constant 0 : index
    %c0_38 = arith.constant 0 : index
    %87 = vector.load %arg2[%c0_37, %c0_38] : memref<64x128xbf16, #tpu.memory_space<vmem>>, vector<32x128xbf16>
    %cst_39 = arith.constant dense<0.000000e+00> : vector<16x128xf32>
    %88 = tpu.matmul %86, %87, %cst_39 {dimension_numbers = #tpu.dot_dimension_numbers<[1], [0], [0], [1], [0, 0, 1, 1], [], []>} : vector<16x32xbf16>, vector<32x128xbf16>, vector<16x128xf32> -> vector<16x128xf32>
    %c3 = arith.constant 3 : index
    %c0_40 = arith.constant 0 : index
    %89 = vector.load %arg4[%c3, %c0_40] : memref<8x128xf32, #tpu.memory_space<vmem>>, vector<1x128xf32>
    %90 = vector.broadcast %89 : vector<1x128xf32> to vector<16x128xf32>
    %91 = arith.addf %88, %90 : vector<16x128xf32>
    %c32 = arith.constant 32 : index
    %c0_41 = arith.constant 0 : index
    %92 = vector.load %arg2[%c32, %c0_41] : memref<64x128xbf16, #tpu.memory_space<vmem>>, vector<32x128xbf16>
    %93 = vector.extract_strided_slice %91 {offsets = [0, 0], sizes = [1, 128], strides = [1, 1]} : vector<16x128xf32> to vector<1x128xf32>
    %94 = vector.extract_strided_slice %91 {offsets = [8, 0], sizes = [1, 128], strides = [1, 1]} : vector<16x128xf32> to vector<1x128xf32>
    %95 = tpu.concatenate %93, %94 in 0 : vector<1x128xf32>, vector<1x128xf32> -> vector<2x128xf32>
    %96 = vector.extract_strided_slice %91 {offsets = [1, 0], sizes = [1, 128], strides = [1, 1]} : vector<16x128xf32> to vector<1x128xf32>
    %97 = vector.extract_strided_slice %91 {offsets = [9, 0], sizes = [1, 128], strides = [1, 1]} : vector<16x128xf32> to vector<1x128xf32>
    %98 = tpu.concatenate %96, %97 in 0 : vector<1x128xf32>, vector<1x128xf32> -> vector<2x128xf32>
    %99 = vector.extract_strided_slice %91 {offsets = [2, 0], sizes = [1, 128], strides = [1, 1]} : vector<16x128xf32> to vector<1x128xf32>
    %100 = vector.extract_strided_slice %91 {offsets = [10, 0], sizes = [1, 128], strides = [1, 1]} : vector<16x128xf32> to vector<1x128xf32>
    %101 = tpu.concatenate %99, %100 in 0 : vector<1x128xf32>, vector<1x128xf32> -> vector<2x128xf32>
    %102 = vector.extract_strided_slice %91 {offsets = [3, 0], sizes = [1, 128], strides = [1, 1]} : vector<16x128xf32> to vector<1x128xf32>
    %103 = vector.extract_strided_slice %91 {offsets = [11, 0], sizes = [1, 128], strides = [1, 1]} : vector<16x128xf32> to vector<1x128xf32>
    %104 = tpu.concatenate %102, %103 in 0 : vector<1x128xf32>, vector<1x128xf32> -> vector<2x128xf32>
    %105 = vector.extract_strided_slice %91 {offsets = [4, 0], sizes = [1, 128], strides = [1, 1]} : vector<16x128xf32> to vector<1x128xf32>
    %106 = vector.extract_strided_slice %91 {offsets = [12, 0], sizes = [1, 128], strides = [1, 1]} : vector<16x128xf32> to vector<1x128xf32>
    %107 = tpu.concatenate %105, %106 in 0 : vector<1x128xf32>, vector<1x128xf32> -> vector<2x128xf32>
    %108 = vector.extract_strided_slice %91 {offsets = [5, 0], sizes = [1, 128], strides = [1, 1]} : vector<16x128xf32> to vector<1x128xf32>
    %109 = vector.extract_strided_slice %91 {offsets = [13, 0], sizes = [1, 128], strides = [1, 1]} : vector<16x128xf32> to vector<1x128xf32>
    %110 = tpu.concatenate %108, %109 in 0 : vector<1x128xf32>, vector<1x128xf32> -> vector<2x128xf32>
    %111 = vector.extract_strided_slice %91 {offsets = [6, 0], sizes = [1, 128], strides = [1, 1]} : vector<16x128xf32> to vector<1x128xf32>
    %112 = vector.extract_strided_slice %91 {offsets = [14, 0], sizes = [1, 128], strides = [1, 1]} : vector<16x128xf32> to vector<1x128xf32>
    %113 = tpu.concatenate %111, %112 in 0 : vector<1x128xf32>, vector<1x128xf32> -> vector<2x128xf32>
    %114 = vector.extract_strided_slice %91 {offsets = [7, 0], sizes = [1, 128], strides = [1, 1]} : vector<16x128xf32> to vector<1x128xf32>
    %115 = vector.extract_strided_slice %91 {offsets = [15, 0], sizes = [1, 128], strides = [1, 1]} : vector<16x128xf32> to vector<1x128xf32>
    %116 = tpu.concatenate %114, %115 in 0 : vector<1x128xf32>, vector<1x128xf32> -> vector<2x128xf32>
    %117 = tpu.iota {dimensions = array<i32: 1>} : vector<1x128xi32>
    %c64_i32 = arith.constant 64 : i32
    %118 = vector.broadcast %c64_i32 : i32 to vector<1x128xi32>
    %119 = arith.cmpi sge, %117, %118 : vector<1x128xi32>
    %c96_i32 = arith.constant 96 : i32
    %120 = vector.broadcast %c96_i32 : i32 to vector<1x128xi32>
    %121 = arith.cmpi slt, %117, %120 : vector<1x128xi32>
    %122 = arith.andi %119, %121 : vector<1x128xi1>
    %cst_42 = arith.constant 2.000000e+00 : f32
    %cst_43 = arith.constant 1.000000e+00 : f32
    %123 = vector.broadcast %cst_42 : f32 to vector<1x128xf32>
    %124 = vector.broadcast %cst_43 : f32 to vector<1x128xf32>
    %125 = arith.select %122, %123, %124 : vector<1x128xi1>, vector<1x128xf32>
    %cst_44 = arith.constant -1.000000e+00 : f32
    %cst_45 = arith.constant 0.000000e+00 : f32
    %126 = vector.broadcast %cst_44 : f32 to vector<1x128xf32>
    %127 = vector.broadcast %cst_45 : f32 to vector<1x128xf32>
    %128 = arith.select %122, %126, %127 : vector<1x128xi1>, vector<1x128xf32>
    %cst_46 = arith.constant 0.000000e+00 : f32
    %129 = vector.broadcast %cst_46 : f32 to vector<2x32xf32>
    %cst_47 = arith.constant 0.000000e+00 : f32
    %130 = vector.broadcast %cst_47 : f32 to vector<2x32xf32>
    %131 = arith.truncf %129 : vector<2x32xf32> to vector<2x32xbf16>
    %cst_48 = arith.constant dense<0.000000e+00> : vector<2x128xf32>
    %132 = tpu.matmul %131, %92, %cst_48 {dimension_numbers = #tpu.dot_dimension_numbers<[1], [0], [0], [1], [0, 0, 1, 1], [], []>} : vector<2x32xbf16>, vector<32x128xbf16>, vector<2x128xf32> -> vector<2x128xf32>
    %133 = arith.addf %95, %132 : vector<2x128xf32>
    %134 = vector.broadcast %125 : vector<1x128xf32> to vector<2x128xf32>
    %135 = arith.mulf %133, %134 : vector<2x128xf32>
    %136 = arith.negf %135 : vector<2x128xf32>
    %137 = math.exp %136 : vector<2x128xf32>
    %cst_49 = arith.constant 1.000000e+00 : f32
    %138 = vector.broadcast %cst_49 : f32 to vector<2x128xf32>
    %139 = arith.addf %138, %137 : vector<2x128xf32>
    %140 = arith.divf %138, %139 : vector<2x128xf32>
    %141 = vector.broadcast %125 : vector<1x128xf32> to vector<2x128xf32>
    %142 = arith.mulf %140, %141 : vector<2x128xf32>
    %143 = vector.broadcast %128 : vector<1x128xf32> to vector<2x128xf32>
    %144 = arith.addf %142, %143 : vector<2x128xf32>
    %145 = vector.extract_strided_slice %144 {offsets = [0, 0], sizes = [2, 32], strides = [1, 1]} : vector<2x128xf32> to vector<2x32xf32>
    %146 = vector.extract_strided_slice %144 {offsets = [0, 32], sizes = [2, 32], strides = [1, 1]} : vector<2x128xf32> to vector<2x32xf32>
    %147 = vector.extract_strided_slice %144 {offsets = [0, 64], sizes = [2, 32], strides = [1, 1]} : vector<2x128xf32> to vector<2x32xf32>
    %148 = vector.extract_strided_slice %144 {offsets = [0, 96], sizes = [2, 32], strides = [1, 1]} : vector<2x128xf32> to vector<2x32xf32>
    %149 = arith.mulf %146, %130 : vector<2x32xf32>
    %150 = arith.mulf %145, %147 : vector<2x32xf32>
    %151 = arith.addf %149, %150 : vector<2x32xf32>
    %152 = math.tanh %151 : vector<2x32xf32>
    %153 = arith.mulf %148, %152 : vector<2x32xf32>
    %154 = arith.truncf %153 : vector<2x32xf32> to vector<2x32xbf16>
    %cst_50 = arith.constant dense<0.000000e+00> : vector<2x128xf32>
    %155 = tpu.matmul %154, %92, %cst_50 {dimension_numbers = #tpu.dot_dimension_numbers<[1], [0], [0], [1], [0, 0, 1, 1], [], []>} : vector<2x32xbf16>, vector<32x128xbf16>, vector<2x128xf32> -> vector<2x128xf32>
    %156 = arith.addf %98, %155 : vector<2x128xf32>
    %157 = vector.broadcast %125 : vector<1x128xf32> to vector<2x128xf32>
    %158 = arith.mulf %156, %157 : vector<2x128xf32>
    %159 = arith.negf %158 : vector<2x128xf32>
    %160 = math.exp %159 : vector<2x128xf32>
    %cst_51 = arith.constant 1.000000e+00 : f32
    %161 = vector.broadcast %cst_51 : f32 to vector<2x128xf32>
    %162 = arith.addf %161, %160 : vector<2x128xf32>
    %163 = arith.divf %161, %162 : vector<2x128xf32>
    %164 = vector.broadcast %125 : vector<1x128xf32> to vector<2x128xf32>
    %165 = arith.mulf %163, %164 : vector<2x128xf32>
    %166 = vector.broadcast %128 : vector<1x128xf32> to vector<2x128xf32>
    %167 = arith.addf %165, %166 : vector<2x128xf32>
    %168 = vector.extract_strided_slice %167 {offsets = [0, 0], sizes = [2, 32], strides = [1, 1]} : vector<2x128xf32> to vector<2x32xf32>
    %169 = vector.extract_strided_slice %167 {offsets = [0, 32], sizes = [2, 32], strides = [1, 1]} : vector<2x128xf32> to vector<2x32xf32>
    %170 = vector.extract_strided_slice %167 {offsets = [0, 64], sizes = [2, 32], strides = [1, 1]} : vector<2x128xf32> to vector<2x32xf32>
    %171 = vector.extract_strided_slice %167 {offsets = [0, 96], sizes = [2, 32], strides = [1, 1]} : vector<2x128xf32> to vector<2x32xf32>
    %172 = arith.mulf %169, %151 : vector<2x32xf32>
    %173 = arith.mulf %168, %170 : vector<2x32xf32>
    %174 = arith.addf %172, %173 : vector<2x32xf32>
    %175 = math.tanh %174 : vector<2x32xf32>
    %176 = arith.mulf %171, %175 : vector<2x32xf32>
    %177 = arith.truncf %176 : vector<2x32xf32> to vector<2x32xbf16>
    %cst_52 = arith.constant dense<0.000000e+00> : vector<2x128xf32>
    %178 = tpu.matmul %177, %92, %cst_52 {dimension_numbers = #tpu.dot_dimension_numbers<[1], [0], [0], [1], [0, 0, 1, 1], [], []>} : vector<2x32xbf16>, vector<32x128xbf16>, vector<2x128xf32> -> vector<2x128xf32>
    %179 = arith.addf %101, %178 : vector<2x128xf32>
    %180 = vector.broadcast %125 : vector<1x128xf32> to vector<2x128xf32>
    %181 = arith.mulf %179, %180 : vector<2x128xf32>
    %182 = arith.negf %181 : vector<2x128xf32>
    %183 = math.exp %182 : vector<2x128xf32>
    %cst_53 = arith.constant 1.000000e+00 : f32
    %184 = vector.broadcast %cst_53 : f32 to vector<2x128xf32>
    %185 = arith.addf %184, %183 : vector<2x128xf32>
    %186 = arith.divf %184, %185 : vector<2x128xf32>
    %187 = vector.broadcast %125 : vector<1x128xf32> to vector<2x128xf32>
    %188 = arith.mulf %186, %187 : vector<2x128xf32>
    %189 = vector.broadcast %128 : vector<1x128xf32> to vector<2x128xf32>
    %190 = arith.addf %188, %189 : vector<2x128xf32>
    %191 = vector.extract_strided_slice %190 {offsets = [0, 0], sizes = [2, 32], strides = [1, 1]} : vector<2x128xf32> to vector<2x32xf32>
    %192 = vector.extract_strided_slice %190 {offsets = [0, 32], sizes = [2, 32], strides = [1, 1]} : vector<2x128xf32> to vector<2x32xf32>
    %193 = vector.extract_strided_slice %190 {offsets = [0, 64], sizes = [2, 32], strides = [1, 1]} : vector<2x128xf32> to vector<2x32xf32>
    %194 = vector.extract_strided_slice %190 {offsets = [0, 96], sizes = [2, 32], strides = [1, 1]} : vector<2x128xf32> to vector<2x32xf32>
    %195 = arith.mulf %192, %174 : vector<2x32xf32>
    %196 = arith.mulf %191, %193 : vector<2x32xf32>
    %197 = arith.addf %195, %196 : vector<2x32xf32>
    %198 = math.tanh %197 : vector<2x32xf32>
    %199 = arith.mulf %194, %198 : vector<2x32xf32>
    %200 = arith.truncf %199 : vector<2x32xf32> to vector<2x32xbf16>
    %cst_54 = arith.constant dense<0.000000e+00> : vector<2x128xf32>
    %201 = tpu.matmul %200, %92, %cst_54 {dimension_numbers = #tpu.dot_dimension_numbers<[1], [0], [0], [1], [0, 0, 1, 1], [], []>} : vector<2x32xbf16>, vector<32x128xbf16>, vector<2x128xf32> -> vector<2x128xf32>
    %202 = arith.addf %104, %201 : vector<2x128xf32>
    %203 = vector.broadcast %125 : vector<1x128xf32> to vector<2x128xf32>
    %204 = arith.mulf %202, %203 : vector<2x128xf32>
    %205 = arith.negf %204 : vector<2x128xf32>
    %206 = math.exp %205 : vector<2x128xf32>
    %cst_55 = arith.constant 1.000000e+00 : f32
    %207 = vector.broadcast %cst_55 : f32 to vector<2x128xf32>
    %208 = arith.addf %207, %206 : vector<2x128xf32>
    %209 = arith.divf %207, %208 : vector<2x128xf32>
    %210 = vector.broadcast %125 : vector<1x128xf32> to vector<2x128xf32>
    %211 = arith.mulf %209, %210 : vector<2x128xf32>
    %212 = vector.broadcast %128 : vector<1x128xf32> to vector<2x128xf32>
    %213 = arith.addf %211, %212 : vector<2x128xf32>
    %214 = vector.extract_strided_slice %213 {offsets = [0, 0], sizes = [2, 32], strides = [1, 1]} : vector<2x128xf32> to vector<2x32xf32>
    %215 = vector.extract_strided_slice %213 {offsets = [0, 32], sizes = [2, 32], strides = [1, 1]} : vector<2x128xf32> to vector<2x32xf32>
    %216 = vector.extract_strided_slice %213 {offsets = [0, 64], sizes = [2, 32], strides = [1, 1]} : vector<2x128xf32> to vector<2x32xf32>
    %217 = vector.extract_strided_slice %213 {offsets = [0, 96], sizes = [2, 32], strides = [1, 1]} : vector<2x128xf32> to vector<2x32xf32>
    %218 = arith.mulf %215, %197 : vector<2x32xf32>
    %219 = arith.mulf %214, %216 : vector<2x32xf32>
    %220 = arith.addf %218, %219 : vector<2x32xf32>
    %221 = math.tanh %220 : vector<2x32xf32>
    %222 = arith.mulf %217, %221 : vector<2x32xf32>
    %223 = arith.truncf %222 : vector<2x32xf32> to vector<2x32xbf16>
    %cst_56 = arith.constant dense<0.000000e+00> : vector<2x128xf32>
    %224 = tpu.matmul %223, %92, %cst_56 {dimension_numbers = #tpu.dot_dimension_numbers<[1], [0], [0], [1], [0, 0, 1, 1], [], []>} : vector<2x32xbf16>, vector<32x128xbf16>, vector<2x128xf32> -> vector<2x128xf32>
    %225 = arith.addf %107, %224 : vector<2x128xf32>
    %226 = vector.broadcast %125 : vector<1x128xf32> to vector<2x128xf32>
    %227 = arith.mulf %225, %226 : vector<2x128xf32>
    %228 = arith.negf %227 : vector<2x128xf32>
    %229 = math.exp %228 : vector<2x128xf32>
    %cst_57 = arith.constant 1.000000e+00 : f32
    %230 = vector.broadcast %cst_57 : f32 to vector<2x128xf32>
    %231 = arith.addf %230, %229 : vector<2x128xf32>
    %232 = arith.divf %230, %231 : vector<2x128xf32>
    %233 = vector.broadcast %125 : vector<1x128xf32> to vector<2x128xf32>
    %234 = arith.mulf %232, %233 : vector<2x128xf32>
    %235 = vector.broadcast %128 : vector<1x128xf32> to vector<2x128xf32>
    %236 = arith.addf %234, %235 : vector<2x128xf32>
    %237 = vector.extract_strided_slice %236 {offsets = [0, 0], sizes = [2, 32], strides = [1, 1]} : vector<2x128xf32> to vector<2x32xf32>
    %238 = vector.extract_strided_slice %236 {offsets = [0, 32], sizes = [2, 32], strides = [1, 1]} : vector<2x128xf32> to vector<2x32xf32>
    %239 = vector.extract_strided_slice %236 {offsets = [0, 64], sizes = [2, 32], strides = [1, 1]} : vector<2x128xf32> to vector<2x32xf32>
    %240 = vector.extract_strided_slice %236 {offsets = [0, 96], sizes = [2, 32], strides = [1, 1]} : vector<2x128xf32> to vector<2x32xf32>
    %241 = arith.mulf %238, %220 : vector<2x32xf32>
    %242 = arith.mulf %237, %239 : vector<2x32xf32>
    %243 = arith.addf %241, %242 : vector<2x32xf32>
    %244 = math.tanh %243 : vector<2x32xf32>
    %245 = arith.mulf %240, %244 : vector<2x32xf32>
    %246 = arith.truncf %245 : vector<2x32xf32> to vector<2x32xbf16>
    %cst_58 = arith.constant dense<0.000000e+00> : vector<2x128xf32>
    %247 = tpu.matmul %246, %92, %cst_58 {dimension_numbers = #tpu.dot_dimension_numbers<[1], [0], [0], [1], [0, 0, 1, 1], [], []>} : vector<2x32xbf16>, vector<32x128xbf16>, vector<2x128xf32> -> vector<2x128xf32>
    %248 = arith.addf %110, %247 : vector<2x128xf32>
    %249 = vector.broadcast %125 : vector<1x128xf32> to vector<2x128xf32>
    %250 = arith.mulf %248, %249 : vector<2x128xf32>
    %251 = arith.negf %250 : vector<2x128xf32>
    %252 = math.exp %251 : vector<2x128xf32>
    %cst_59 = arith.constant 1.000000e+00 : f32
    %253 = vector.broadcast %cst_59 : f32 to vector<2x128xf32>
    %254 = arith.addf %253, %252 : vector<2x128xf32>
    %255 = arith.divf %253, %254 : vector<2x128xf32>
    %256 = vector.broadcast %125 : vector<1x128xf32> to vector<2x128xf32>
    %257 = arith.mulf %255, %256 : vector<2x128xf32>
    %258 = vector.broadcast %128 : vector<1x128xf32> to vector<2x128xf32>
    %259 = arith.addf %257, %258 : vector<2x128xf32>
    %260 = vector.extract_strided_slice %259 {offsets = [0, 0], sizes = [2, 32], strides = [1, 1]} : vector<2x128xf32> to vector<2x32xf32>
    %261 = vector.extract_strided_slice %259 {offsets = [0, 32], sizes = [2, 32], strides = [1, 1]} : vector<2x128xf32> to vector<2x32xf32>
    %262 = vector.extract_strided_slice %259 {offsets = [0, 64], sizes = [2, 32], strides = [1, 1]} : vector<2x128xf32> to vector<2x32xf32>
    %263 = vector.extract_strided_slice %259 {offsets = [0, 96], sizes = [2, 32], strides = [1, 1]} : vector<2x128xf32> to vector<2x32xf32>
    %264 = arith.mulf %261, %243 : vector<2x32xf32>
    %265 = arith.mulf %260, %262 : vector<2x32xf32>
    %266 = arith.addf %264, %265 : vector<2x32xf32>
    %267 = math.tanh %266 : vector<2x32xf32>
    %268 = arith.mulf %263, %267 : vector<2x32xf32>
    %269 = arith.truncf %268 : vector<2x32xf32> to vector<2x32xbf16>
    %cst_60 = arith.constant dense<0.000000e+00> : vector<2x128xf32>
    %270 = tpu.matmul %269, %92, %cst_60 {dimension_numbers = #tpu.dot_dimension_numbers<[1], [0], [0], [1], [0, 0, 1, 1], [], []>} : vector<2x32xbf16>, vector<32x128xbf16>, vector<2x128xf32> -> vector<2x128xf32>
    %271 = arith.addf %113, %270 : vector<2x128xf32>
    %272 = vector.broadcast %125 : vector<1x128xf32> to vector<2x128xf32>
    %273 = arith.mulf %271, %272 : vector<2x128xf32>
    %274 = arith.negf %273 : vector<2x128xf32>
    %275 = math.exp %274 : vector<2x128xf32>
    %cst_61 = arith.constant 1.000000e+00 : f32
    %276 = vector.broadcast %cst_61 : f32 to vector<2x128xf32>
    %277 = arith.addf %276, %275 : vector<2x128xf32>
    %278 = arith.divf %276, %277 : vector<2x128xf32>
    %279 = vector.broadcast %125 : vector<1x128xf32> to vector<2x128xf32>
    %280 = arith.mulf %278, %279 : vector<2x128xf32>
    %281 = vector.broadcast %128 : vector<1x128xf32> to vector<2x128xf32>
    %282 = arith.addf %280, %281 : vector<2x128xf32>
    %283 = vector.extract_strided_slice %282 {offsets = [0, 0], sizes = [2, 32], strides = [1, 1]} : vector<2x128xf32> to vector<2x32xf32>
    %284 = vector.extract_strided_slice %282 {offsets = [0, 32], sizes = [2, 32], strides = [1, 1]} : vector<2x128xf32> to vector<2x32xf32>
    %285 = vector.extract_strided_slice %282 {offsets = [0, 64], sizes = [2, 32], strides = [1, 1]} : vector<2x128xf32> to vector<2x32xf32>
    %286 = vector.extract_strided_slice %282 {offsets = [0, 96], sizes = [2, 32], strides = [1, 1]} : vector<2x128xf32> to vector<2x32xf32>
    %287 = arith.mulf %284, %266 : vector<2x32xf32>
    %288 = arith.mulf %283, %285 : vector<2x32xf32>
    %289 = arith.addf %287, %288 : vector<2x32xf32>
    %290 = math.tanh %289 : vector<2x32xf32>
    %291 = arith.mulf %286, %290 : vector<2x32xf32>
    %292 = arith.truncf %291 : vector<2x32xf32> to vector<2x32xbf16>
    %cst_62 = arith.constant dense<0.000000e+00> : vector<2x128xf32>
    %293 = tpu.matmul %292, %92, %cst_62 {dimension_numbers = #tpu.dot_dimension_numbers<[1], [0], [0], [1], [0, 0, 1, 1], [], []>} : vector<2x32xbf16>, vector<32x128xbf16>, vector<2x128xf32> -> vector<2x128xf32>
    %294 = arith.addf %116, %293 : vector<2x128xf32>
    %295 = vector.broadcast %125 : vector<1x128xf32> to vector<2x128xf32>
    %296 = arith.mulf %294, %295 : vector<2x128xf32>
    %297 = arith.negf %296 : vector<2x128xf32>
    %298 = math.exp %297 : vector<2x128xf32>
    %cst_63 = arith.constant 1.000000e+00 : f32
    %299 = vector.broadcast %cst_63 : f32 to vector<2x128xf32>
    %300 = arith.addf %299, %298 : vector<2x128xf32>
    %301 = arith.divf %299, %300 : vector<2x128xf32>
    %302 = vector.broadcast %125 : vector<1x128xf32> to vector<2x128xf32>
    %303 = arith.mulf %301, %302 : vector<2x128xf32>
    %304 = vector.broadcast %128 : vector<1x128xf32> to vector<2x128xf32>
    %305 = arith.addf %303, %304 : vector<2x128xf32>
    %306 = vector.extract_strided_slice %305 {offsets = [0, 0], sizes = [2, 32], strides = [1, 1]} : vector<2x128xf32> to vector<2x32xf32>
    %307 = vector.extract_strided_slice %305 {offsets = [0, 32], sizes = [2, 32], strides = [1, 1]} : vector<2x128xf32> to vector<2x32xf32>
    %308 = vector.extract_strided_slice %305 {offsets = [0, 64], sizes = [2, 32], strides = [1, 1]} : vector<2x128xf32> to vector<2x32xf32>
    %309 = vector.extract_strided_slice %305 {offsets = [0, 96], sizes = [2, 32], strides = [1, 1]} : vector<2x128xf32> to vector<2x32xf32>
    %310 = arith.mulf %307, %289 : vector<2x32xf32>
    %311 = arith.mulf %306, %308 : vector<2x32xf32>
    %312 = arith.addf %310, %311 : vector<2x32xf32>
    %313 = math.tanh %312 : vector<2x32xf32>
    %314 = arith.mulf %309, %313 : vector<2x32xf32>
    %cst_64 = arith.constant 0.000000e+00 : f32
    %315 = vector.broadcast %cst_64 : f32 to vector<6x32xf32>
    %316 = tpu.concatenate %314, %315 in 0 : vector<2x32xf32>, vector<6x32xf32> -> vector<8x32xf32>
    %317 = arith.truncf %316 : vector<8x32xf32> to vector<8x32xbf16>
    %c0_65 = arith.constant 0 : index
    %c0_66 = arith.constant 0 : index
    %318 = vector.load %arg3[%c0_65, %c0_66] : memref<160x128xbf16, #tpu.memory_space<vmem>>, vector<32x128xbf16>
    %cst_67 = arith.constant dense<0.000000e+00> : vector<8x128xf32>
    %319 = tpu.matmul %317, %318, %cst_67 {dimension_numbers = #tpu.dot_dimension_numbers<[1], [0], [0], [1], [0, 0, 1, 1], [], []>} : vector<8x32xbf16>, vector<32x128xbf16>, vector<8x128xf32> -> vector<8x128xf32>
    %c4 = arith.constant 4 : index
    %c0_68 = arith.constant 0 : index
    %320 = vector.load %arg4[%c4, %c0_68] : memref<8x128xf32, #tpu.memory_space<vmem>>, vector<1x128xf32>
    %321 = vector.broadcast %320 : vector<1x128xf32> to vector<8x128xf32>
    %322 = arith.addf %319, %321 : vector<8x128xf32>
    %cst_69 = arith.constant 0.00999999977 : f32
    %323 = vector.broadcast %cst_69 : f32 to vector<8x128xf32>
    %324 = arith.mulf %322, %323 : vector<8x128xf32>
    %325 = math.tanh %324 : vector<8x128xf32>
    %326 = arith.truncf %325 : vector<8x128xf32> to vector<8x128xbf16>
    %c32_70 = arith.constant 32 : index
    %c0_71 = arith.constant 0 : index
    %327 = vector.load %arg3[%c32_70, %c0_71] : memref<160x128xbf16, #tpu.memory_space<vmem>>, vector<128x128xbf16>
    %cst_72 = arith.constant dense<0.000000e+00> : vector<8x128xf32>
    %328 = tpu.matmul %326, %327, %cst_72 {dimension_numbers = #tpu.dot_dimension_numbers<[1], [0], [0], [1], [0, 0, 1, 1], [], []>} : vector<8x128xbf16>, vector<128x128xbf16>, vector<8x128xf32> -> vector<8x128xf32>
    %c5 = arith.constant 5 : index
    %c0_73 = arith.constant 0 : index
    %329 = vector.load %arg4[%c5, %c0_73] : memref<8x128xf32, #tpu.memory_space<vmem>>, vector<1x128xf32>
    %330 = vector.broadcast %329 : vector<1x128xf32> to vector<8x128xf32>
    %331 = arith.addf %328, %330 : vector<8x128xf32>
    %c0_74 = arith.constant 0 : index
    %c0_75 = arith.constant 0 : index
    %332 = vector.load %arg5[%c0_74, %c0_75] : memref<8x128xf32, #tpu.memory_space<vmem>>, vector<8x128xf32>
    tpu.vector_store %arg5[%c0_74, %c0_75], %331 {strides = array<i32>} : memref<8x128xf32, #tpu.memory_space<vmem>>, vector<8x128xf32>,
    return
  }
}

</mosaic_0001>

<bundles_post_ra>
// kernel: res_lstm_forward.1
= control target key start
LH: loop header
LB: loop body
LE: loop exit
PB: predicated region body
PF: predicated region fallthrough
CT: control target
= control target key end

     0   :  { %v1761_v3 = vmov 0.0   ;;  %vm1762_vm0 = vmmov 0   ;;  %s1763_s28 = smov 16   ;;  %s1764_s8 = smov 32   ;;  %vm34_vm1 = vcmask 130048   ;;  %vm36_vm2 = vcmask 261120   ;;  %s2209_s0 = inlined_call_operand.vmem [shape: f32[36,16], index: 0, kind: input, shape index: {}]   ;;  %s2210_s1 = inlined_call_operand.vmem [shape: bf16[240,32], index: 1, kind: input, shape index: {}]   ;;  %s2211_s4 = inlined_call_operand.vmem [shape: f32[8,128], index: 4, kind: input, shape index: {}]   ;;  %s2212_s2 = inlined_call_operand.vmem [shape: bf16[64,128], index: 2, kind: input, shape index: {}]   ;;  %s2213_s3 = inlined_call_operand.vmem [shape: bf16[160,128], index: 3, kind: input, shape index: {}]   ;;  %s2214_s5 = inlined_call_operand.vmem [shape: f32[8,128], index: 5, kind: output, shape index: {}]  }
   0x1   :  { %v1377_v0 = vld [vmem:[%s2209_s0 + $0x1] ss:$2 sm:$0xff]  ;;  %v1378_v2 = vld [vmem:[%s2209_s0 + $0x2] ss:$2 sm:$0xff]  ;;  %1494 = vmatprep.subr.bf16.mxu1 %v1761_v3  ;;  %1500 = vmatprep.mubr.msk.bf16.mxu1 %vm1762_vm0, %v1761_v3  ;;  %v1379_v13 = vld [vmem:[%s2209_s0 + $0x12] ss:$2 sm:$0xff]  ;;  %v131_v27 = vlaneseq }
   0x2   :  { %v1380_v1 = vld [vmem:[%s2209_s0 + $0x13] ss:$2 sm:$0xff]  ;;  %v1381_v5 = vld [vmem:[%s2209_s0 + $0x14] ss:$2 sm:$0xff]  ;;  %1520 = vmatprep.subr.bf16.mxu0 %v1761_v3  ;;  %1532 = vmatprep.mubr.msk.bf16.mxu0 %vm1762_vm0, %v1761_v3  ;;  %v1681_v8 = vld [vmem:[%s2210_s1 + $0x8] sm:$0xff]   ;;  %vm84_vm3 = vcmask 392192  }
   0x3   :  { %v1650_v4 = vpack.i.bf16 %v1380_v1, %v1377_v0  ;;  %v1680_v6 = vld [vmem:[%s2210_s1] sm:$0xff]   ;;  %v1655_v7 = vpack.i.bf16 %v1381_v5, %v1378_v2  ;;  %v1682_v9 = vld [vmem:[%s2210_s1 + $0x10] sm:$0xff]   ;;  %v1683_v23 = vld [vmem:[%s2210_s1 + $0x18] sm:$0xff]   ;;  %v1857_v28 = vshrl.u32 %v131_v27, 7  ;;  %s1765_s26 = smov 64   ;;  %vm207_vm10 = vcmask 523264  }
   0x4   :  { %1495 = vmatpush3.bf16.msra.mxu1 %v1680_v6  ;;  %v21_v14 = vld [vmem:[%s2209_s0] ss:$2 sm:$0xff]  ;;  %v1686_v26 = vld [vmem:[%s2210_s1 + $0x30] sm:$0xff]   ;;  %v1687_v29 = vld [vmem:[%s2210_s1 + $0x38] sm:$0xff]   ;;  %vm251_vm11 = vcmask 785408   ;;  %vm547_vm14 = vcmask 1040384  }
   0x5   :  { %1651 = vrot.lane.b32.xlu0 %v1650_v4, %s1763_s28  ;;  %1496 = vmatprep.subr.bf16.mxu1 %v1761_v3  ;;  %v1684_v24 = vld [vmem:[%s2210_s1 + $0x20] sm:$0xff]   ;;  %v1685_v25 = vld [vmem:[%s2210_s1 + $0x28] sm:$0xff]   ;;  %v133_v31 = vadd.s32 8, %v1857_v28  ;;  %v138_v37 = vand.u32 7, %v1857_v28  ;;  %vm184_vm5 = vcmp.lt.s32.totalorder %v1857_v28, 7  ;;  %vm177_vm7 = vcmp.lt.s32.totalorder %v1857_v28, 1 }
   0x6   :  { %v1382_v30 = vld [vmem:[%s2211_s4] ss:$0 sm:$0xff]  ;;  %s1766_s30 = smov 1e-12  }
   0x7   :  { %v1688_v33 = vld [vmem:[%s2210_s1 + $0x40] sm:$0xff]   ;;  %v145_v41 = vand.u32 7, %v133_v31  ;;  %vm1876_vm4 = vcmp.ne.s32.totalorder %v138_v37, 7  ;;  %vm1902_vm8 = vcmp.ne.s32.totalorder %v138_v37, 0 }
   0x8   :  { %1497 = vmatpush3.bf16.msra.mxu1 %v1681_v8 }
   0x9   :  { %1656 = vrot.lane.b32.xlu0 %v1655_v7, %s1764_s8  ;;  %1498 = vmatprep.subr.bf16.mxu1 %v1761_v3  ;;  %vm1885_vm6 = vcmp.ne.s32.totalorder %v145_v41, 7  ;;  %vm1906_vm9 = vcmp.ne.s32.totalorder %v145_v41, 0 }
   0xc   :  { %1499 = vmatpush3.bf16.msra.mxu1 %v1682_v9  ;;  %v1689_v9 = vld [vmem:[%s2210_s1 + $0x48] sm:$0xff]  }
   0xd   :  { %1504 = vmatprep.subr.bf16.mxu1 %v1761_v3  ;;  %1521 = vmatpush3.bf16.msra.mxu0 %v1689_v9 }
   0xe   :  { %1522 = vmatprep.subr.bf16.mxu0 %v1761_v3 }
  0x77   :  { %v1652_v10 = vpop.permute.xlu0 %1651 }
  0x78   :  { %v1654_v11 = vunpack.i.h.bf16 %v1652_v10  ;;  %v1653_v12 = vunpack.i.l.bf16 %v1652_v10  ;;  %v1690_v10 = vld [vmem:[%s2210_s1 + $0x50] sm:$0xff]  }
  0x79   :  { %1523 = vmatpush3.bf16.msra.mxu0 %v1690_v10 }
  0x7a   :  { %v52_v18 = vsel %vm34_vm1, %v1379_v13, %v1654_v11  ;;  %v35_v19 = vsel %vm34_vm1, %v21_v14, %v1653_v12  ;;  %v1691_v11 = vld [vmem:[%s2210_s1 + $0x58] sm:$0xff]   ;;  %1524 = vmatprep.subr.bf16.mxu0 %v1761_v3  ;;  %v1692_v12 = vld [vmem:[%s2210_s1 + $0x60] sm:$0xff]   ;;  %v1693_v13 = vld [vmem:[%s2210_s1 + $0x68] sm:$0xff]  }
  0x7b   :  { %v1657_v15 = vpop.permute.xlu0 %1656  ;;  %v1387_v14 = vld [vmem:[%s2211_s4 + $0x1] ss:$0 sm:$0xff] }
  0x7c   :  { %v1659_v16 = vunpack.i.h.bf16 %v1657_v15  ;;  %v1658_v17 = vunpack.i.l.bf16 %v1657_v15 }
  0x7d   :  { %1525 = vmatpush3.bf16.msra.mxu0 %v1691_v11 }
  0x7e   :  { %v37_v20 = vsel %vm36_vm2, %v35_v19, %v1658_v17  ;;  %v53_v21 = vsel %vm36_vm2, %v52_v18, %v1659_v16  ;;  %1526 = vmatprep.subr.bf16.mxu0 %v1761_v3  ;;  %v1694_v16 = vld [vmem:[%s2210_s1 + $0x70] sm:$0xff]  }
  0x7f   :  { %v54_v22 = vpack.c.bf16 %v53_v21, %v37_v20 }
  0x81   :  { %1501 = vmatmul.mubr.msk.bf16.vlgmr.msra.gmra.mrb[0].mxu1 %vm84_vm3, %v54_v22  ;;  %1527 = vmatpush3.bf16.msra.mxu0 %v1692_v12 }
  0x82   :  { %1516 = vmatprep.mubr.msk.bf16.mxu1 %vm1762_vm0, %v1761_v3  ;;  %1505 = vmatpush3.bf16.msra.mxu1 %v1683_v23 }
  0x83   :  { %1506 = vmatprep.subr.bf16.mxu1 %v1761_v3  ;;  %1528 = vmatprep.subr.bf16.mxu0 %v1761_v3 }
  0x85   :  { %1529 = vmatpush3.bf16.msra.mxu0 %v1693_v13 }
  0x86   :  { %1507 = vmatpush3.bf16.msra.mxu1 %v1684_v24  ;;  %1530 = vmatprep.subr.bf16.mxu0 %v1761_v3 }
  0x87   :  { %1508 = vmatprep.subr.bf16.mxu1 %v1761_v3 }
  0x89   :  { %1531 = vmatpush3.bf16.msra.mxu0 %v1694_v16  ;;  %v1695_v16 = vld [vmem:[%s2212_s2] sm:$0xff]  }
  0x8a   :  { %1509 = vmatpush3.bf16.msra.mxu1 %v1685_v25  ;;  %1552 = vmatprep.subr.bf16.mxu0 %v1761_v3 }
  0x8b   :  { %1510 = vmatprep.subr.bf16.mxu1 %v1761_v3 }
  0x8e   :  { %1511 = vmatpush3.bf16.msra.mxu1 %v1686_v26 }
  0x8f   :  { %1512 = vmatprep.subr.bf16.mxu1 %v1761_v3 }
  0x92   :  { %1513 = vmatpush3.bf16.msra.mxu1 %v1687_v29 }
  0x93   :  { %1514 = vmatprep.subr.bf16.mxu1 %v1761_v3 }
  0x96   :  { %1515 = vmatpush3.bf16.msra.mxu1 %v1688_v33 }
  0x97   :  { %1536 = vmatprep.subr.bf16.mxu1 %v1761_v3 }
 0x154   :  { %v122_v32 = vpop.f32.mrb[0].mxu1 }
 0x155   :  { %v123_v34 = vadd.f32 %v1382_v30, %v122_v32  ;;  %v1502_v35 = vpop.f32.mrb[1].mxu1 }
 0x156   :  { %v125_v36 = vpop.f32.mrb[2].mxu1 }
 0x157   :  { %v1871_v38 = vmax.f32 %v123_v34, 0.0  ;;  %v126_v39 = vadd.f32 %v1382_v30, %v125_v36  ;;  %v1503_v40 = vpop.f32.mrb[3].mxu1 }
 0x159   :  { %v1874_v42 = vmax.f32 %v126_v39, 0.0  ;;  %v182_v44 = vrot.slane %v1871_v38, 1  ;;  %v175_v54 = vrot.slane %v1871_v38, 7 }
 0x15b   :  { %v183_v45 = vrot.slane %v1874_v42, 1  ;;  %v1660_v46 = vpack.i.bf16 %v1874_v42, %v1871_v38  ;;  %v176_v53 = vrot.slane %v1874_v42, 7 }
 0x15d   :  { %1661 = vrot.lane.b32.xlu1 %v1660_v46, %s1764_s8  ;;  %v185_v48 = vsel %vm184_vm5, %v182_v44, %v183_v45  ;;  %v186_v49 = vsel %vm184_vm5, %v183_v45, %v182_v44  ;;  %v178_v60 = vsel %vm177_vm7, %v175_v54, %v176_v53  ;;  %v179_v61 = vsel %vm177_vm7, %v176_v53, %v175_v54 }
 0x15e   :  { %v187_v50 = vsel %vm1876_vm4, %v185_v48, 0.0  ;;  %v188_v51 = vsel %vm1885_vm6, %v186_v49, 0.0  ;;  %v180_v63 = vsel %vm1902_vm8, %v179_v61, 0.0  ;;  %v181_v0 = vsel %vm1906_vm9, %v178_v60, 0.0 }
 0x15f   :  { %v1665_v52 = vpack.i.bf16 %v188_v51, %v187_v50 }
 0x161   :  { %1666 = vrot.lane.b32.xlu1 %v1665_v52, %s1765_s26  ;;  %v1395_v52 = vld [vmem:[%s2211_s4 + $0x2] ss:$0 sm:$0xff] }
 0x1cf   :  { %v1662_v55 = vpop.permute.xlu1 %1661 }
 0x1d0   :  { %v1664_v58 = vunpack.i.h.bf16 %v1662_v55  ;;  %v1663_v59 = vunpack.i.l.bf16 %v1662_v55 }
 0x1d2   :  { %v205_v4 = vsel %vm36_vm2, %v180_v63, %v1663_v59  ;;  %v206_v5 = vsel %vm36_vm2, %v181_v0, %v1664_v58 }
 0x1d3   :  { %v1667_v62 = vpop.permute.xlu1 %1666 }
 0x1d4   :  { %v1669_v1 = vunpack.i.h.bf16 %v1667_v62  ;;  %v1668_v2 = vunpack.i.l.bf16 %v1667_v62 }
 0x1d6   :  { %v208_v6 = vsel %vm207_vm10, %v205_v4, %v1668_v2  ;;  %v209_v7 = vsel %vm207_vm10, %v206_v5, %v1669_v1 }
 0x1d7   :  { %v210_v8 = vpack.c.bf16 %v209_v7, %v208_v6 }
 0x1d9   :  { %1517 = vmatmul.mubr.msk.bf16.vlgmr.msra.gmra.mrb[4].mxu1 %vm251_vm11, %v210_v8 }
 0x1da   :  { %1540 = vmatprep.mubr.msk.bf16.mxu1 %vm1762_vm0, %v1761_v3  ;;  %1537 = vmatpush3.bf16.msra.mxu1 %v1695_v16 }
 0x1db   :  { %1538 = vmatprep.subr.bf16.mxu1 %v1761_v3 }
 0x2ac   :  { %v289_v15 = vpop.f32.mrb[4].mxu1 }
 0x2ad   :  { %v290_v17 = vadd.f32 %v1387_v14, %v289_v15  ;;  %v1518_v18 = vpop.f32.mrb[5].mxu1 }
 0x2ae   :  { %v292_v19 = vpop.f32.mrb[6].mxu1  ;;  %v1696_v18 = vld [vmem:[%s2212_s2 + $0x8] sm:$0xff]  }
 0x2af   :  { %v296_v20 = vmax.f32 %v290_v17, 0.0  ;;  %v293_v21 = vadd.f32 %v1387_v14, %v292_v19  ;;  %v1519_v22 = vpop.f32.mrb[7].mxu1  ;;  %1539 = vmatpush3.bf16.msra.mxu1 %v1696_v18 }
 0x2b0   :  { %1544 = vmatprep.subr.bf16.mxu1 %v1761_v3 }
 0x2b1   :  { %v297_v23 = vmax.f32 %v293_v21, 0.0  ;;  %v311_v24 = vrot.slane %v296_v20, 7  ;;  %v317_v25 = vrot.slane %v296_v20, 1  ;;  %v1997_v21 = vld [vmem:[%s2212_s2 + $0x10] sm:$0xff]  }
 0x2b3   :  { %v312_v26 = vrot.slane %v297_v23, 7  ;;  %v318_v29 = vrot.slane %v297_v23, 1  ;;  %v1670_v30 = vpack.i.bf16 %v297_v23, %v296_v20 }
 0x2b5   :  { %1671 = vrot.lane.b32.xlu0 %v1670_v30, %s1764_s8  ;;  %v319_v31 = vsel %vm184_vm5, %v317_v25, %v318_v29  ;;  %v320_v32 = vsel %vm184_vm5, %v318_v29, %v317_v25  ;;  %v313_v33 = vsel %vm177_vm7, %v311_v24, %v312_v26  ;;  %v314_v34 = vsel %vm177_vm7, %v312_v26, %v311_v24  ;;  %v2004_v24 = vld [vmem:[%s2212_s2 + $0x18] sm:$0xff]  }
 0x2b6   :  { %v321_v35 = vsel %vm1876_vm4, %v319_v31, 0.0  ;;  %v322_v36 = vsel %vm1885_vm6, %v320_v32, 0.0  ;;  %v315_v45 = vsel %vm1902_vm8, %v314_v34, 0.0  ;;  %v316_v28 = vsel %vm1906_vm9, %v313_v33, 0.0 }
 0x2b7   :  { %v1675_v37 = vpack.i.bf16 %v322_v36, %v321_v35  ;;  %v1767_v35 = vmov 0   ;;  %v584_v36 = vand.u32 127, %v131_v27 }
 0x2b9   :  { %1676 = vrot.lane.b32.xlu1 %v1675_v37, %s1765_s26  ;;  %v1403_v37 = vld [vmem:[%s2211_s4 + $0x3] ss:$0 sm:$0xff]  ;;  %vm585_vm12 = vcmp.ge.s32.totalorder %v584_v36, 64  ;;  %vm586_vm13 = vcmp.lt.s32.totalorder %v584_v36, 96 }
 0x2ba   :  { %vm2025_vm15 = vmand %vm585_vm12, %vm586_vm13 }
 0x327   :  { %v1672_v39 = vpop.permute.xlu0 %1671 }
 0x328   :  { %v1674_v40 = vunpack.i.h.bf16 %v1672_v39  ;;  %v1673_v41 = vunpack.i.l.bf16 %v1672_v39 }
 0x32a   :  { %v339_v43 = vsel %vm36_vm2, %v315_v45, %v1673_v41  ;;  %v340_v47 = vsel %vm36_vm2, %v316_v28, %v1674_v40 }
 0x32b   :  { %v1677_v44 = vpop.permute.xlu1 %1676 }
 0x32c   :  { %v1679_v46 = vunpack.i.h.bf16 %v1677_v44  ;;  %v1678_v48 = vunpack.i.l.bf16 %v1677_v44 }
 0x32e   :  { %v341_v49 = vsel %vm207_vm10, %v339_v43, %v1678_v48  ;;  %v342_v50 = vsel %vm207_vm10, %v340_v47, %v1679_v46 }
 0x32f   :  { %v343_v51 = vpack.c.bf16 %v342_v50, %v341_v49 }
 0x331   :  { %1533 = vmatmul.mubr.msk.bf16.vlgmr.msra.gmra.mrb[0].mxu0 %vm251_vm11, %v343_v51 }
 0x332   :  { %1556 = vmatprep.mubr.msk.bf16.mxu0 %vm1762_vm0, %v1761_v3  ;;  %1553 = vmatpush3.bf16.msra.mxu0 %v1997_v21 }
 0x333   :  { %1554 = vmatprep.subr.bf16.mxu0 %v1761_v3 }
 0x336   :  { %1555 = vmatpush3.bf16.msra.mxu0 %v2004_v24 }
 0x337   :  { %1568 = vmatprep.subr.bf16.mxu0 %v1761_v3 }
 0x404   :  { %v421_v53 = vpop.f32.mrb[0].mxu0 }
 0x405   :  { %v422_v54 = vadd.f32 %v1395_v52, %v421_v53  ;;  %v1534_v55 = vpop.f32.mrb[1].mxu0 }
 0x406   :  { %v424_v56 = vpop.f32.mrb[2].mxu0 }
 0x407   :  { %v428_v57 = vadd.f32 %v422_v54, %v1871_v38  ;;  %v425_v58 = vadd.f32 %v1395_v52, %v424_v56  ;;  %v1535_v59 = vpop.f32.mrb[3].mxu0 }
 0x409   :  { %v430_v60 = vmax.f32 %v428_v57, 0.0  ;;  %v429_v61 = vadd.f32 %v425_v58, %v1874_v42 }
 0x40b   :  { %v431_v62 = vmax.f32 %v429_v61, 0.0  ;;  %v432_v63 = vsel %vm36_vm2, %v430_v60, 0.0 }
 0x40d   :  { %v433_v0 = vsel %vm36_vm2, %v431_v62, 0.0 }
 0x40e   :  { %v434_v1 = vadd.f32 %v433_v0, %v432_v63 }
 0x410   :  { %435 = vadd.xlane.f32.xlu0 %v434_v1 }
 0x49d   :  { %v436_v2 = vpop.xlane.xlu0 %435 }
 0x49e   :  { %v437_v4 = vrot.slane %v436_v2, 4 }
 0x4a0   :  { %v438_v5 = vadd.f32 %v437_v4, %v436_v2 }
 0x4a2   :  { %v439_v6 = vrot.slane %v438_v5, 2 }
 0x4a4   :  { %v440_v7 = vadd.f32 %v439_v6, %v438_v5 }
 0x4a6   :  { %v441_v8 = vrot.slane %v440_v7, 1 }
 0x4a8   :  { %v442_v9 = vadd.f32 %v441_v8, %v440_v7 }
 0x4aa   :  { %1636 = vpush %v442_v9 }
 0x4db   :  { %s1637_s17 = spop %1636 }
 0x4dc   :  { %s446_s18 = smul.f32 0.001953125, %s1637_s17 }
 0x4de   :  { %v447_v38 = vstv %s446_s18 }
 0x4df   :  { %v448_v10 = vsub.f32 %v430_v60, %v447_v38  ;;  %v449_v42 = vsub.f32 %v431_v62, %v447_v38  ;;  %v1768_v60 = vmov 1.0  }
 0x4e0   :  { %v2032_v61 = vsel %vm2025_vm15, 2.0, %v1768_v60 }
 0x4e1   :  { %v450_v11 = vmul.f32 %v448_v10, %v448_v10  ;;  %v451_v12 = vmul.f32 %v449_v42, %v449_v42 }
 0x4e3   :  { %v452_v13 = vsel %vm36_vm2, %v450_v11, 0.0  ;;  %v453_v14 = vsel %vm36_vm2, %v451_v12, 0.0 }
 0x4e4   :  { %v454_v15 = vadd.f32 %v453_v14, %v452_v13  ;;  %v2057_v14 = vsel %vm2025_vm15, -1.0, %v1761_v3 }
 0x4e6   :  { %455 = vadd.xlane.f32.xlu1 %v454_v15 }
 0x573   :  { %v456_v17 = vpop.xlane.xlu1 %455 }
 0x574   :  { %v457_v19 = vrot.slane %v456_v17, 4 }
 0x576   :  { %v458_v20 = vadd.f32 %v457_v19, %v456_v17 }
 0x578   :  { %v459_v22 = vrot.slane %v458_v20, 2 }
 0x57a   :  { %v460_v23 = vadd.f32 %v459_v22, %v458_v20 }
 0x57c   :  { %v461_v25 = vrot.slane %v460_v23, 1 }
 0x57e   :  { %v462_v26 = vadd.f32 %v461_v25, %v460_v23 }
 0x580   :  { %1638 = vpush %v462_v26 }
 0x5b1   :  { %s1639_s28 = spop %1638 }
 0x5b2   :  { %s466_s29 = smul.f32 0.0019569471, %s1639_s28 }
 0x5b4   :  { %s467_s6 = smax.f32 %s1766_s30, %s466_s29 }
 0x5b5   :  { %v468_v29 = vstv %s467_s6 }
 0x5b6   :  { %1709 = vrsqrt.f32 %v468_v29 }
 0x5c0   :  { %v1710_v30 = vpop.eup %1709 }
 0x5c1   :  { %1640 = vpush %v1710_v30 }
 0x5f2   :  { %s1641_s7 = spop %1640 }
 0x5f3   :  { %v471_v31 = vstv %s1641_s7 }
 0x5f4   :  { %v472_v32 = vmul.f32 %v471_v31, %v448_v10  ;;  %v473_v33 = vmul.f32 %v471_v31, %v449_v42 }
 0x5f6   :  { %v474_v34 = vpack.c.bf16 %v473_v33, %v472_v32 }
 0x5f8   :  { %1541 = vmatmul.mubr.msk.bf16.vlgmr.msra.gmra.mrb[8].mxu1 %vm36_vm2, %v474_v34 }
 0x5f9   :  { %1545 = vmatpush3.bf16.msra.mxu1 %v1997_v21  ;;  %1548 = vmatprep.mubr.msk.bf16.mxu1 %vm1762_vm0, %v1761_v3 }
 0x5fa   :  { %1546 = vmatprep.subr.bf16.mxu1 %v1761_v3 }
 0x5fd   :  { %1547 = vmatpush3.bf16.msra.mxu1 %v2004_v24 }
 0x5fe   :  { %1560 = vmatprep.subr.bf16.mxu1 %v1761_v3 }
 0x600   :  { %1549 = vmatmul.mubr.bf16.vlgmr.msra.gmra.mrb[12].mxu1 %v1767_v35 }
 0x601   :  { %1561 = vmatpush3.bf16.msra.mxu1 %v1997_v21  ;;  %1564 = vmatprep.mubr.msk.bf16.mxu1 %vm1762_vm0, %v1761_v3 }
 0x602   :  { %1562 = vmatprep.subr.bf16.mxu1 %v1761_v3 }
 0x605   :  { %1563 = vmatpush3.bf16.msra.mxu1 %v2004_v24 }
 0x606   :  { %1576 = vmatprep.subr.bf16.mxu1 %v1761_v3 }
 0x6cb   :  { %v533_v39 = vpop.f32.mrb[8].mxu1 }
 0x6cc   :  { %v534_v40 = vadd.f32 %v1403_v37, %v533_v39  ;;  %v1542_v41 = vpop.f32.mrb[9].mxu1 }
 0x6cd   :  { %v536_v44 = vpop.f32.mrb[10].mxu1 }
 0x6ce   :  { %v537_v45 = vadd.f32 %v1403_v37, %v536_v44  ;;  %v1543_v28 = vpop.f32.mrb[11].mxu1  ;;  %v550_v46 = vrot.slane %v534_v40, 1  ;;  %v553_v48 = vrot.slane %v534_v40, 2  ;;  %v558_v43 = vrot.slane %v534_v40, 3 }
 0x6cf   :  { %v563_v27 = vrot.slane %v534_v40, 4  ;;  %v568_v49 = vrot.slane %v534_v40, 5  ;;  %v573_v50 = vrot.slane %v534_v40, 6  ;;  %v578_v51 = vrot.slane %v534_v40, 7 }
 0x6d0   :  { %v545_v52 = vrot.slane %v537_v45, 7  ;;  %v552_v53 = vsel %vm547_vm14, %v550_v46, %v537_v45  ;;  %v555_v54 = vrot.slane %v537_v45, 1  ;;  %v560_v55 = vrot.slane %v537_v45, 2 }
 0x6d1   :  { %v565_v56 = vrot.slane %v537_v45, 3  ;;  %v570_v57 = vrot.slane %v537_v45, 4  ;;  %v575_v58 = vrot.slane %v537_v45, 5  ;;  %v580_v59 = vrot.slane %v537_v45, 6 }
 0x6d2   :  { %v548_v62 = vsel %vm547_vm14, %v534_v40, %v545_v52  ;;  %v2036_v63 = vsel %vm547_vm14, %v553_v48, %v555_v54  ;;  %v2039_v0 = vsel %vm547_vm14, %v558_v43, %v560_v55 }
 0x6d3   :  { %v639_v1 = vpop.f32.mrb[12].mxu1  ;;  %v2042_v2 = vsel %vm547_vm14, %v563_v27, %v565_v56  ;;  %v2045_v4 = vsel %vm547_vm14, %v568_v49, %v570_v57  ;;  %v2048_v5 = vsel %vm547_vm14, %v573_v50, %v575_v58  ;;  %v2051_v6 = vsel %vm547_vm14, %v578_v51, %v580_v59 }
 0x6d4   :  { %v645_v7 = vadd.f32 %v639_v1, %v548_v62  ;;  %v1550_v8 = vpop.f32.mrb[13].mxu1 }
 0x6d5   :  { %v642_v9 = vpop.f32.mrb[14].mxu1 }
 0x6d6   :  { %v646_v38 = vmul.f32 %v645_v7, %v2032_v61  ;;  %v1551_v10 = vpop.f32.mrb[15].mxu1 }
 0x6d8   :  { %v1409_v42 = vmul.f32 -1.442695, %v646_v38 }
 0x6da   :  { %1711 = vpow2.f32 %v1409_v42 }
 0x6e4   :  { %v1712_v11 = vpop.eup %1711 }
 0x6e5   :  { %v650_v12 = vadd.f32 1.0, %v1712_v11 }
 0x6e7   :  { %1713 = vrcp.f32 %v650_v12 }
 0x6f1   :  { %v1714_v13 = vpop.eup %1713 }
 0x6f2   :  { %v653_v15 = vmul.f32 %v1714_v13, %v2032_v61 }
 0x6f4   :  { %v654_v16 = vadd.f32 %v653_v15, %v2057_v14 }
 0x6f6   :  { %657 = vrot.lane.b32.xlu0 %v654_v16, %s1765_s26  ;;  %v655_v19 = vmul.f32 0.0, %v654_v16 }
 0x768   :  { %v658_v17 = vpop.permute.xlu0 %657 }
 0x769   :  { %v660_v18 = vmul.f32 %v658_v17, %v654_v16 }
 0x76b   :  { %662 = vrot.lane.b32.xlu1 %v660_v18, %s1764_s8 }
 0x7dd   :  { %v663_v20 = vpop.permute.xlu1 %662 }
 0x7de   :  { %v665_v22 = vadd.f32 %v663_v20, %v655_v19 }
 0x7e0   :  { %1715 = vtanh.f32 %v665_v22 }
 0x7ea   :  { %v1716_v23 = vpop.eup %1715 }
 0x7eb   :  { %668 = vrot.lane.b32.xlu0 %v1716_v23, %s1765_s26 }
 0x85d   :  { %v669_v25 = vpop.permute.xlu0 %668 }
 0x85e   :  { %v671_v26 = vmul.f32 %v669_v25, %v654_v16 }
 0x860   :  { %v672_v29 = vpack.c.bf16 %v671_v26, %v671_v26 }
 0x862   :  { %674 = vrot.lane.b32.xlu1 %v672_v29, %s1764_s8 }
 0x8d4   :  { %v675_v30 = vpop.permute.xlu1 %674 }
 0x8d5   :  { %1557 = vmatmul.mubr.msk.bf16.vlgmr.msra.gmra.mrb[4].mxu0 %vm36_vm2, %v675_v30 }
 0x8d6   :  { %1569 = vmatpush3.bf16.msra.mxu0 %v1997_v21  ;;  %1572 = vmatprep.mubr.msk.bf16.mxu0 %vm1762_vm0, %v1761_v3 }
 0x8d7   :  { %1570 = vmatprep.subr.bf16.mxu0 %v1761_v3 }
 0x8da   :  { %1571 = vmatpush3.bf16.msra.mxu0 %v2004_v24 }
 0x8db   :  { %1584 = vmatprep.subr.bf16.mxu0 %v1761_v3 }
 0x9a8   :  { %v713_v31 = vpop.f32.mrb[4].mxu0 }
 0x9a9   :  { %v719_v32 = vadd.f32 %v713_v31, %v552_v53  ;;  %v1558_v33 = vpop.f32.mrb[5].mxu0 }
 0x9aa   :  { %v716_v34 = vpop.f32.mrb[6].mxu0 }
 0x9ab   :  { %v720_v35 = vmul.f32 %v719_v32, %v2032_v61  ;;  %v1559_v36 = vpop.f32.mrb[7].mxu0 }
 0x9ad   :  { %v1411_v37 = vmul.f32 -1.442695, %v720_v35 }
 0x9af   :  { %1717 = vpow2.f32 %v1411_v37 }
 0x9b9   :  { %v1718_v39 = vpop.eup %1717 }
 0x9ba   :  { %v724_v40 = vadd.f32 1.0, %v1718_v39 }
 0x9bc   :  { %1719 = vrcp.f32 %v724_v40 }
 0x9c6   :  { %v1720_v41 = vpop.eup %1719 }
 0x9c7   :  { %v727_v44 = vmul.f32 %v1720_v41, %v2032_v61 }
 0x9c9   :  { %v728_v45 = vadd.f32 %v727_v44, %v2057_v14 }
 0x9cb   :  { %731 = vrot.lane.b32.xlu0 %v728_v45, %s1765_s26  ;;  %v729_v48 = vmul.f32 %v728_v45, %v665_v22 }
 0xa3d   :  { %v732_v28 = vpop.permute.xlu0 %731 }
 0xa3e   :  { %v734_v46 = vmul.f32 %v732_v28, %v728_v45 }
 0xa40   :  { %736 = vrot.lane.b32.xlu1 %v734_v46, %s1764_s8 }
 0xab2   :  { %v737_v43 = vpop.permute.xlu1 %736 }
 0xab3   :  { %v739_v47 = vadd.f32 %v737_v43, %v729_v48 }
 0xab5   :  { %1721 = vtanh.f32 %v739_v47 }
 0xabf   :  { %v1722_v27 = vpop.eup %1721 }
 0xac0   :  { %742 = vrot.lane.b32.xlu0 %v1722_v27, %s1765_s26 }
 0xb32   :  { %v743_v49 = vpop.permute.xlu0 %742 }
 0xb33   :  { %v745_v50 = vmul.f32 %v743_v49, %v728_v45 }
 0xb35   :  { %v746_v51 = vpack.c.bf16 %v745_v50, %v745_v50 }
 0xb37   :  { %748 = vrot.lane.b32.xlu1 %v746_v51, %s1764_s8 }
 0xba9   :  { %v749_v52 = vpop.permute.xlu1 %748 }
 0xbaa   :  { %1565 = vmatmul.mubr.msk.bf16.vlgmr.msra.gmra.mrb[16].mxu1 %vm36_vm2, %v749_v52 }
 0xbab   :  { %1577 = vmatpush3.bf16.msra.mxu1 %v1997_v21  ;;  %1580 = vmatprep.mubr.msk.bf16.mxu1 %vm1762_vm0, %v1761_v3 }
 0xbac   :  { %1578 = vmatprep.subr.bf16.mxu1 %v1761_v3 }
 0xbaf   :  { %1579 = vmatpush3.bf16.msra.mxu1 %v2004_v24 }
 0xbb0   :  { %1592 = vmatprep.subr.bf16.mxu1 %v1761_v3 }
 0xc7d   :  { %v787_v53 = vpop.f32.mrb[16].mxu1 }
 0xc7e   :  { %v793_v54 = vadd.f32 %v787_v53, %v2036_v63  ;;  %v1566_v55 = vpop.f32.mrb[17].mxu1 }
 0xc7f   :  { %v790_v56 = vpop.f32.mrb[18].mxu1 }
 0xc80   :  { %v794_v57 = vmul.f32 %v793_v54, %v2032_v61  ;;  %v1567_v58 = vpop.f32.mrb[19].mxu1 }
 0xc82   :  { %v1413_v59 = vmul.f32 -1.442695, %v794_v57 }
 0xc84   :  { %1723 = vpow2.f32 %v1413_v59 }
 0xc8e   :  { %v1724_v60 = vpop.eup %1723 }
 0xc8f   :  { %v798_v62 = vadd.f32 1.0, %v1724_v60 }
 0xc91   :  { %1725 = vrcp.f32 %v798_v62 }
 0xc9b   :  { %v1726_v1 = vpop.eup %1725 }
 0xc9c   :  { %v801_v7 = vmul.f32 %v1726_v1, %v2032_v61 }
 0xc9e   :  { %v802_v8 = vadd.f32 %v801_v7, %v2057_v14 }
 0xca0   :  { %805 = vrot.lane.b32.xlu0 %v802_v8, %s1765_s26  ;;  %v803_v63 = vmul.f32 %v802_v8, %v739_v47 }
 0xd12   :  { %v806_v9 = vpop.permute.xlu0 %805 }
 0xd13   :  { %v808_v38 = vmul.f32 %v806_v9, %v802_v8 }
 0xd15   :  { %810 = vrot.lane.b32.xlu1 %v808_v38, %s1764_s8 }
 0xd87   :  { %v811_v10 = vpop.permute.xlu1 %810 }
 0xd88   :  { %v813_v42 = vadd.f32 %v811_v10, %v803_v63 }
 0xd8a   :  { %1727 = vtanh.f32 %v813_v42 }
 0xd94   :  { %v1728_v11 = vpop.eup %1727 }
 0xd95   :  { %816 = vrot.lane.b32.xlu0 %v1728_v11, %s1765_s26 }
 0xe07   :  { %v817_v12 = vpop.permute.xlu0 %816 }
 0xe08   :  { %v819_v13 = vmul.f32 %v817_v12, %v802_v8 }
 0xe0a   :  { %v820_v15 = vpack.c.bf16 %v819_v13, %v819_v13 }
 0xe0c   :  { %822 = vrot.lane.b32.xlu1 %v820_v15, %s1764_s8 }
 0xe7e   :  { %v823_v16 = vpop.permute.xlu1 %822 }
 0xe7f   :  { %1573 = vmatmul.mubr.msk.bf16.vlgmr.msra.gmra.mrb[8].mxu0 %vm36_vm2, %v823_v16 }
 0xe80   :  { %1585 = vmatpush3.bf16.msra.mxu0 %v1997_v21  ;;  %1588 = vmatprep.mubr.msk.bf16.mxu0 %vm1762_vm0, %v1761_v3 }
 0xe81   :  { %1586 = vmatprep.subr.bf16.mxu0 %v1761_v3 }
 0xe84   :  { %1587 = vmatpush3.bf16.msra.mxu0 %v2004_v24 }
 0xe85   :  { %1600 = vmatprep.subr.bf16.mxu0 %v1761_v3 }
 0xf52   :  { %v861_v17 = vpop.f32.mrb[8].mxu0 }
 0xf53   :  { %v867_v18 = vadd.f32 %v861_v17, %v2039_v0  ;;  %v1574_v19 = vpop.f32.mrb[9].mxu0 }
 0xf54   :  { %v864_v20 = vpop.f32.mrb[10].mxu0 }
 0xf55   :  { %v868_v22 = vmul.f32 %v867_v18, %v2032_v61  ;;  %v1575_v23 = vpop.f32.mrb[11].mxu0 }
 0xf57   :  { %v1415_v25 = vmul.f32 -1.442695, %v868_v22 }
 0xf59   :  { %1729 = vpow2.f32 %v1415_v25 }
 0xf63   :  { %v1730_v26 = vpop.eup %1729 }
 0xf64   :  { %v872_v29 = vadd.f32 1.0, %v1730_v26 }
 0xf66   :  { %1731 = vrcp.f32 %v872_v29 }
 0xf70   :  { %v1732_v30 = vpop.eup %1731 }
 0xf71   :  { %v875_v31 = vmul.f32 %v1732_v30, %v2032_v61 }
 0xf73   :  { %v876_v32 = vadd.f32 %v875_v31, %v2057_v14 }
 0xf75   :  { %879 = vrot.lane.b32.xlu0 %v876_v32, %s1765_s26  ;;  %v877_v0 = vmul.f32 %v876_v32, %v813_v42 }
 0xfe7   :  { %v880_v33 = vpop.permute.xlu0 %879 }
 0xfe8   :  { %v882_v34 = vmul.f32 %v880_v33, %v876_v32 }
 0xfea   :  { %884 = vrot.lane.b32.xlu1 %v882_v34, %s1764_s8 }
0x105c   :  { %v885_v35 = vpop.permute.xlu1 %884 }
0x105d   :  { %v887_v36 = vadd.f32 %v885_v35, %v877_v0 }
0x105f   :  { %1733 = vtanh.f32 %v887_v36 }
0x1069   :  { %v1734_v37 = vpop.eup %1733 }
0x106a   :  { %890 = vrot.lane.b32.xlu0 %v1734_v37, %s1765_s26 }
0x10dc   :  { %v891_v39 = vpop.permute.xlu0 %890 }
0x10dd   :  { %v893_v40 = vmul.f32 %v891_v39, %v876_v32 }
0x10df   :  { %v894_v41 = vpack.c.bf16 %v893_v40, %v893_v40 }
0x10e1   :  { %896 = vrot.lane.b32.xlu1 %v894_v41, %s1764_s8 }
0x1153   :  { %v897_v44 = vpop.permute.xlu1 %896 }
0x1154   :  { %1581 = vmatmul.mubr.msk.bf16.vlgmr.msra.gmra.mrb[20].mxu1 %vm36_vm2, %v897_v44 }
0x1155   :  { %1593 = vmatpush3.bf16.msra.mxu1 %v1997_v21  ;;  %1596 = vmatprep.mubr.msk.bf16.mxu1 %vm1762_vm0, %v1761_v3 }
0x1156   :  { %1594 = vmatprep.subr.bf16.mxu1 %v1761_v3 }
0x1159   :  { %1595 = vmatpush3.bf16.msra.mxu1 %v2004_v24 }
0x115a   :  { %1608 = vmatprep.subr.bf16.mxu1 %v1761_v3 }
0x1227   :  { %v935_v45 = vpop.f32.mrb[20].mxu1 }
0x1228   :  { %v941_v28 = vadd.f32 %v935_v45, %v2042_v2  ;;  %v1582_v46 = vpop.f32.mrb[21].mxu1 }
0x1229   :  { %v938_v48 = vpop.f32.mrb[22].mxu1 }
0x122a   :  { %v942_v43 = vmul.f32 %v941_v28, %v2032_v61  ;;  %v1583_v47 = vpop.f32.mrb[23].mxu1 }
0x122c   :  { %v1417_v27 = vmul.f32 -1.442695, %v942_v43 }
0x122e   :  { %1735 = vpow2.f32 %v1417_v27 }
0x1238   :  { %v1736_v49 = vpop.eup %1735 }
0x1239   :  { %v946_v50 = vadd.f32 1.0, %v1736_v49 }
0x123b   :  { %1737 = vrcp.f32 %v946_v50 }
0x1245   :  { %v1738_v51 = vpop.eup %1737 }
0x1246   :  { %v949_v52 = vmul.f32 %v1738_v51, %v2032_v61 }
0x1248   :  { %v950_v53 = vadd.f32 %v949_v52, %v2057_v14 }
0x124a   :  { %953 = vrot.lane.b32.xlu0 %v950_v53, %s1765_s26  ;;  %v951_v2 = vmul.f32 %v950_v53, %v887_v36 }
0x12bc   :  { %v954_v54 = vpop.permute.xlu0 %953 }
0x12bd   :  { %v956_v55 = vmul.f32 %v954_v54, %v950_v53 }
0x12bf   :  { %958 = vrot.lane.b32.xlu1 %v956_v55, %s1764_s8 }
0x1331   :  { %v959_v56 = vpop.permute.xlu1 %958 }
0x1332   :  { %v961_v57 = vadd.f32 %v959_v56, %v951_v2 }
0x1334   :  { %1739 = vtanh.f32 %v961_v57 }
0x133e   :  { %v1740_v58 = vpop.eup %1739 }
0x133f   :  { %964 = vrot.lane.b32.xlu0 %v1740_v58, %s1765_s26 }
0x13b1   :  { %v965_v59 = vpop.permute.xlu0 %964 }
0x13b2   :  { %v967_v60 = vmul.f32 %v965_v59, %v950_v53 }
0x13b4   :  { %v968_v62 = vpack.c.bf16 %v967_v60, %v967_v60 }
0x13b6   :  { %970 = vrot.lane.b32.xlu1 %v968_v62, %s1764_s8 }
0x1428   :  { %v971_v1 = vpop.permute.xlu1 %970 }
0x1429   :  { %1589 = vmatmul.mubr.msk.bf16.vlgmr.msra.gmra.mrb[12].mxu0 %vm36_vm2, %v971_v1 }
0x142a   :  { %1601 = vmatpush3.bf16.msra.mxu0 %v1997_v21  ;;  %1604 = vmatprep.mubr.msk.bf16.mxu0 %vm1762_vm0, %v1761_v3 }
0x142b   :  { %1602 = vmatprep.subr.bf16.mxu0 %v1761_v3 }
0x142e   :  { %1603 = vmatpush3.bf16.msra.mxu0 %v2004_v24 }
0x142f   :  { %1616 = vmatprep.subr.bf16.mxu0 %v1761_v3 }
0x14fc   :  { %v1009_v7 = vpop.f32.mrb[12].mxu0 }
0x14fd   :  { %v1015_v8 = vadd.f32 %v1009_v7, %v2045_v4  ;;  %v1590_v9 = vpop.f32.mrb[13].mxu0  ;;  %v1699_v7 = vld [vmem:[%s2213_s3] sm:$0xff]  }
0x14fe   :  { %v1012_v38 = vpop.f32.mrb[14].mxu0  ;;  %v1702_v9 = vld [vmem:[%s2213_s3 + $0x18] sm:$0xff]  }
0x14ff   :  { %v1016_v63 = vmul.f32 %v1015_v8, %v2032_v61  ;;  %v1591_v10 = vpop.f32.mrb[15].mxu0  ;;  %v1701_v8 = vld [vmem:[%s2213_s3 + $0x10] sm:$0xff]   ;;  %v1703_v38 = vld [vmem:[%s2213_s3 + $0x20] sm:$0xff]  }
0x1501   :  { %v1419_v42 = vmul.f32 -1.442695, %v1016_v63 }
0x1503   :  { %1741 = vpow2.f32 %v1419_v42 }
0x150d   :  { %v1742_v21 = vpop.eup %1741 }
0x150e   :  { %v1020_v11 = vadd.f32 1.0, %v1742_v21  ;;  %v1704_v21 = vld [vmem:[%s2213_s3 + $0x28] sm:$0xff]  }
0x1510   :  { %1743 = vrcp.f32 %v1020_v11 }
0x151a   :  { %v1744_v12 = vpop.eup %1743 }
0x151b   :  { %v1023_v13 = vmul.f32 %v1744_v12, %v2032_v61 }
0x151d   :  { %v1024_v24 = vadd.f32 %v1023_v13, %v2057_v14  ;;  %v1705_v13 = vld [vmem:[%s2213_s3 + $0x30] sm:$0xff]  }
0x151f   :  { %1027 = vrot.lane.b32.xlu0 %v1024_v24, %s1765_s26  ;;  %v1025_v4 = vmul.f32 %v1024_v24, %v961_v57 }
0x1591   :  { %v1028_v15 = vpop.permute.xlu0 %1027 }
0x1592   :  { %v1030_v16 = vmul.f32 %v1028_v15, %v1024_v24  ;;  %v1707_v15 = vld [vmem:[%s2213_s3 + $0x40] sm:$0xff]  }
0x1594   :  { %1032 = vrot.lane.b32.xlu1 %v1030_v16, %s1764_s8  ;;  %v1708_v16 = vld [vmem:[%s2213_s3 + $0x48] sm:$0xff]  }
0x1606   :  { %v1033_v17 = vpop.permute.xlu1 %1032 }
0x1607   :  { %v1035_v18 = vadd.f32 %v1033_v17, %v1025_v4  ;;  %v1424_v4 = vld [vmem:[%s2211_s4 + $0x4] ss:$0 sm:$0xff] }
0x1609   :  { %1745 = vtanh.f32 %v1035_v18 }
0x1613   :  { %v1746_v19 = vpop.eup %1745 }
0x1614   :  { %1038 = vrot.lane.b32.xlu0 %v1746_v19, %s1765_s26 }
0x1686   :  { %v1039_v20 = vpop.permute.xlu0 %1038 }
0x1687   :  { %v1041_v22 = vmul.f32 %v1039_v20, %v1024_v24  ;;  %v1706_v24 = vld [vmem:[%s2213_s3 + $0x38] sm:$0xff]  }
0x1689   :  { %v1042_v23 = vpack.c.bf16 %v1041_v22, %v1041_v22 }
0x168b   :  { %1044 = vrot.lane.b32.xlu1 %v1042_v23, %s1764_s8 }
0x16fd   :  { %v1045_v25 = vpop.permute.xlu1 %1044 }
0x16fe   :  { %1597 = vmatmul.mubr.msk.bf16.vlgmr.msra.gmra.mrb[24].mxu1 %vm36_vm2, %v1045_v25 }
0x16ff   :  { %1612 = vmatprep.mubr.msk.bf16.mxu1 %vm1762_vm0, %v1761_v3  ;;  %1609 = vmatpush3.bf16.msra.mxu1 %v1699_v7 }
0x1700   :  { %1610 = vmatprep.subr.bf16.mxu1 %v1761_v3 }
0x17d1   :  { %v1083_v26 = vpop.f32.mrb[24].mxu1 }
0x17d2   :  { %v1089_v29 = vadd.f32 %v1083_v26, %v2048_v5  ;;  %v1598_v30 = vpop.f32.mrb[25].mxu1 }
0x17d3   :  { %v1086_v31 = vpop.f32.mrb[26].mxu1 }
0x17d4   :  { %v1090_v32 = vmul.f32 %v1089_v29, %v2032_v61  ;;  %v1599_v33 = vpop.f32.mrb[27].mxu1 }
0x17d6   :  { %v1421_v34 = vmul.f32 -1.442695, %v1090_v32 }
0x17d8   :  { %1747 = vpow2.f32 %v1421_v34 }
0x17e2   :  { %v1748_v0 = vpop.eup %1747 }
0x17e3   :  { %v1094_v35 = vadd.f32 1.0, %v1748_v0 }
0x17e5   :  { %1749 = vrcp.f32 %v1094_v35 }
0x17ef   :  { %v1750_v36 = vpop.eup %1749 }
0x17f0   :  { %v1097_v37 = vmul.f32 %v1750_v36, %v2032_v61 }
0x17f2   :  { %v1098_v39 = vadd.f32 %v1097_v37, %v2057_v14 }
0x17f4   :  { %1101 = vrot.lane.b32.xlu0 %v1098_v39, %s1765_s26  ;;  %v1099_v5 = vmul.f32 %v1098_v39, %v1035_v18 }
0x1866   :  { %v1102_v40 = vpop.permute.xlu0 %1101 }
0x1867   :  { %v1104_v41 = vmul.f32 %v1102_v40, %v1098_v39 }
0x1869   :  { %1106 = vrot.lane.b32.xlu1 %v1104_v41, %s1764_s8 }
0x18db   :  { %v1107_v44 = vpop.permute.xlu1 %1106 }
0x18dc   :  { %v1109_v45 = vadd.f32 %v1107_v44, %v1099_v5 }
0x18de   :  { %1751 = vtanh.f32 %v1109_v45 }
0x18e8   :  { %v1752_v28 = vpop.eup %1751 }
0x18e9   :  { %1112 = vrot.lane.b32.xlu0 %v1752_v28, %s1765_s26 }
0x195b   :  { %v1113_v46 = vpop.permute.xlu0 %1112 }
0x195c   :  { %v1115_v48 = vmul.f32 %v1113_v46, %v1098_v39 }
0x195e   :  { %v1116_v43 = vpack.c.bf16 %v1115_v48, %v1115_v48 }
0x1960   :  { %1118 = vrot.lane.b32.xlu1 %v1116_v43, %s1764_s8 }
0x19d2   :  { %v1119_v47 = vpop.permute.xlu1 %1118 }
0x19d3   :  { %1605 = vmatmul.mubr.msk.bf16.vlgmr.msra.gmra.mrb[16].mxu0 %vm36_vm2, %v1119_v47 }
0x19d4   :  { %1632 = vmatprep.mubr.msk.bf16.mxu0 %vm1762_vm0, %v1761_v3  ;;  %1617 = vmatpush3.bf16.msra.mxu0 %v1701_v8  ;;  %vm1190_vm0 = vcmask 1041408  }
0x19d5   :  { %1618 = vmatprep.subr.bf16.mxu0 %v1761_v3 }
0x19d8   :  { %1619 = vmatpush3.bf16.msra.mxu0 %v1702_v9 }
0x19d9   :  { %1620 = vmatprep.subr.bf16.mxu0 %v1761_v3 }
0x19dc   :  { %1621 = vmatpush3.bf16.msra.mxu0 %v1703_v38 }
0x19dd   :  { %1622 = vmatprep.subr.bf16.mxu0 %v1761_v3 }
0x19e0   :  { %1623 = vmatpush3.bf16.msra.mxu0 %v1704_v21 }
0x19e1   :  { %1624 = vmatprep.subr.bf16.mxu0 %v1761_v3 }
0x19e4   :  { %1625 = vmatpush3.bf16.msra.mxu0 %v1705_v13 }
0x19e5   :  { %1626 = vmatprep.subr.bf16.mxu0 %v1761_v3 }
0x19e8   :  { %1627 = vmatpush3.bf16.msra.mxu0 %v1706_v24 }
0x19e9   :  { %1628 = vmatprep.subr.bf16.mxu0 %v1761_v3 }
0x19ec   :  { %1629 = vmatpush3.bf16.msra.mxu0 %v1707_v15 }
0x19ed   :  { %1630 = vmatprep.subr.bf16.mxu0 %v1761_v3  ;;  %v1428_v3 = vld [vmem:[%s2211_s4 + $0x5] ss:$0 sm:$0xff] }
0x19f0   :  { %1631 = vmatpush3.bf16.msra.mxu0 %v1708_v16 }
0x1aa6   :  { %v1157_v27 = vpop.f32.mrb[16].mxu0 }
0x1aa7   :  { %v1163_v49 = vadd.f32 %v1157_v27, %v2051_v6  ;;  %v1606_v50 = vpop.f32.mrb[17].mxu0 }
0x1aa8   :  { %v1160_v51 = vpop.f32.mrb[18].mxu0 }
0x1aa9   :  { %v1164_v52 = vmul.f32 %v1163_v49, %v2032_v61  ;;  %v1607_v53 = vpop.f32.mrb[19].mxu0 }
0x1aab   :  { %v1423_v54 = vmul.f32 -1.442695, %v1164_v52 }
0x1aad   :  { %1753 = vpow2.f32 %v1423_v54 }
0x1ab7   :  { %v1754_v55 = vpop.eup %1753 }
0x1ab8   :  { %v1168_v2 = vadd.f32 1.0, %v1754_v55 }
0x1aba   :  { %1755 = vrcp.f32 %v1168_v2 }
0x1ac4   :  { %v1756_v56 = vpop.eup %1755 }
0x1ac5   :  { %v1171_v57 = vmul.f32 %v1756_v56, %v2032_v61  ;;  %v1700_v61 = vld [vmem:[%s2213_s3 + $0x8] sm:$0xff]  }
0x1ac6   :  { %1611 = vmatpush3.bf16.msra.mxu1 %v1700_v61 }
0x1ac7   :  { %v1172_v58 = vadd.f32 %v1171_v57, %v2057_v14 }
0x1ac9   :  { %1175 = vrot.lane.b32.xlu0 %v1172_v58, %s1765_s26  ;;  %v1173_v6 = vmul.f32 %v1172_v58, %v1109_v45 }
0x1b3b   :  { %v1176_v59 = vpop.permute.xlu0 %1175 }
0x1b3c   :  { %v1178_v60 = vmul.f32 %v1176_v59, %v1172_v58 }
0x1b3e   :  { %1180 = vrot.lane.b32.xlu1 %v1178_v60, %s1764_s8 }
0x1bb0   :  { %v1181_v62 = vpop.permute.xlu1 %1180 }
0x1bb1   :  { %v1183_v1 = vadd.f32 %v1181_v62, %v1173_v6 }
0x1bb3   :  { %1757 = vtanh.f32 %v1183_v1 }
0x1bbd   :  { %v1758_v14 = vpop.eup %1757 }
0x1bbe   :  { %1186 = vrot.lane.b32.xlu0 %v1758_v14, %s1765_s26 }
0x1c30   :  { %v1187_v63 = vpop.permute.xlu0 %1186 }
0x1c31   :  { %v1189_v10 = vmul.f32 %v1187_v63, %v1172_v58 }
0x1c33   :  { %v1191_v42 = vsel %vm1190_vm0, %v1189_v10, 0.0 }
0x1c34   :  { %v1192_v11 = vpack.c.bf16 %v1191_v42, %v1191_v42 }
0x1c36   :  { %1203 = vrot.lane.b32.xlu1 %v1192_v11, %s1764_s8 }
0x1ca8   :  { %v1204_v12 = vpop.permute.xlu1 %1203 }
0x1ca9   :  { %1613 = vmatmul.mubr.msk.bf16.vlgmr.msra.gmra.mrb[28].mxu1 %vm36_vm2, %v1204_v12 }
0x1d7c   :  { %v1254_v17 = vpop.f32.mrb[28].mxu1 }
0x1d7d   :  { %v1255_v18 = vadd.f32 %v1424_v4, %v1254_v17  ;;  %v1614_v19 = vpop.f32.mrb[29].mxu1 }
0x1d7e   :  { %v1257_v20 = vpop.f32.mrb[30].mxu1 }
0x1d7f   :  { %v1260_v22 = vmul.f32 0.01, %v1255_v18  ;;  %v1615_v23 = vpop.f32.mrb[31].mxu1 }
0x1d81   :  { %1759 = vtanh.f32 %v1260_v22 }
0x1d8b   :  { %v1760_v25 = vpop.eup %1759 }
0x1d8c   :  { %v1262_v26 = vpack.c.bf16 %v1760_v25, %v1760_v25 }
0x1d8e   :  { %1633 = vmatmul.mubr.bf16.vlgmr.msra.gmra.mrb[20].mxu0 %v1262_v26 }
0x1e61   :  { %v1366_v29 = vpop.f32.mrb[20].mxu0 }
0x1e62   :  { %v1367_v30 = vadd.f32 %v1428_v3, %v1366_v29  ;;  %v1634_v31 = vpop.f32.mrb[21].mxu0 }
0x1e63   :  { %v1369_v32 = vpop.f32.mrb[22].mxu0 }
0x1e64   :  { %1372 = vst [vmem:[%s2214_s5] sm:$0xff] %v1367_v30  ;;  %v1635_v33 = vpop.f32.mrb[23].mxu0 }

</bundles_post_ra>
